<compile_context>
chip_gen: v6e
topology: v6e:2x2x1
jax: 0.10.0
libtpu: 0.0.40
codegen_flags: <defaults>
</compile_context>

<pallas_src>
import functools

import jax
import jax.numpy as jnp
import numpy as np
from jax.experimental import pallas as pl
from jax.experimental.pallas import tpu as pltpu

BN_EPS = 1e-5
LANE = 128


def _round_up(x, m):
    return (x + m - 1) // m * m


def _vmem_limit_bytes(N_pad, Cp, ICp, Nsub, tn):
    """Footprint estimate (bytes) with double-buffering + per-tile intermediates."""
    bf, f4 = 2, 4
    resident = (
        2 * N_pad * Cp * bf          # resident per-batch x block (bf16), double-buffered
        + 2 * tn * Cp * f4           # output tile (f32), double-buffered
        + 2 * (Cp * 3 * ICp) * bf    # w_in (bf16) x2
        + 2 * (3 * ICp) * f4         # b_in (f32) x2
        + 2 * (ICp * Cp) * bf        # w_out (bf16) x2
        + 2 * Cp * f4                # b_out (f32) x2
        + 2 * Nsub * ICp * bf        # phi^T + g scratch (bf16)
    )
    interm = f4 * (3 * tn * Nsub + 4 * tn * ICp + 2 * tn * Cp)   # f/e, theta/y, wy/res
    interm += f4 * N_pad * 2 * ICp                               # once-per-batch pg
    total = resident + interm
    return int(min(max(total * 1.25, 32 * 2**20), 56 * 2**20))


def _nonlocal_kernel(Nsub, ICp, tn,
                     x_ref, w_in_ref, b_in_ref, w_out_ref, b_out_ref,
                     z_ref, phiT_sc, g_sc):
    n = pl.program_id(1)

    # ---- once per batch: fused phi|g projection + 2x2 max-pool, cached in VMEM.
    #      phi is stored transposed so the per-tile f matmul needs no RHS relayout.
    @pl.when(n == 0)
    def _():
        xg = x_ref[0]                                                     # (N_pad, Cp) bf16
        pg = jnp.dot(xg, w_in_ref[:, ICp:],
                     preferred_element_type=jnp.float32) + b_in_ref[:, ICp:]  # (N_pad, 2*ICp) f32
        # Padded token rows sit after 4*Nsub, so these slices only see real tokens.
        pooled = jnp.maximum(
            jnp.maximum(pg[0 * Nsub:1 * Nsub], pg[1 * Nsub:2 * Nsub]),
            jnp.maximum(pg[2 * Nsub:3 * Nsub], pg[3 * Nsub:4 * Nsub]))        # (Nsub, 2*ICp)
        phiT_sc[...] = pooled[:, :ICp].T.astype(jnp.bfloat16)                 # (ICp, Nsub)
        g_sc[...] = pooled[:, ICp:].astype(jnp.bfloat16)                      # (Nsub, ICp)

    # ---- per q-tile (VMEM slice of the resident per-batch block; no extra HBM read).
    start = pl.multiple_of(n * tn, tn)
    x_t = x_ref[0, pl.ds(start, tn), :]                                   # (tn, Cp) bf16
    theta = jnp.dot(x_t, w_in_ref[:, :ICp],
                    preferred_element_type=jnp.float32) + b_in_ref[:, :ICp]   # (tn, ICp) f32

    # f = theta @ phi^T   (plain contraction against the pre-transposed scratch)
    f = jnp.dot(theta.astype(jnp.bfloat16), phiT_sc[...],
                preferred_element_type=jnp.float32)                       # (tn, Nsub) f32

    m = jnp.max(f, axis=-1, keepdims=True)
    e = jnp.exp(f - m)
    s = jnp.sum(e, axis=-1, keepdims=True)
    inv_s = pl.reciprocal(s, approx=False)                                # (tn, 1) on EUP

    # Fold the softmax denominator AFTER the matmul: scale the (tn, ICp) tile.
    y = jnp.dot(e.astype(jnp.bfloat16), g_sc[...],
                preferred_element_type=jnp.float32) * inv_s               # (tn, ICp) f32

    # W (1x1 conv) with inference BatchNorm pre-folded into w_out/b_out, plus residual.
    wy = jnp.dot(y.astype(jnp.bfloat16), w_out_ref[...],
                 preferred_element_type=jnp.float32) + b_out_ref[...]
    z_ref[0] = wy + x_t.astype(jnp.float32)


def nonlocal_block_pallas(x_nchw, params, *, tile_n=256):
    """x_nchw: (B, C, H, W) float32.  Returns z in NCHW (same semantics as the torch module)."""
    B, C, H, W = x_nchw.shape
    IC = params["theta_w"].shape[1]
    assert H % 2 == 0 and W % 2 == 0, "2x2 max-pool grouping needs even H and W"
    Hs, Ws = H // 2, W // 2
    Nsub = Hs * Ws
    N = H * W

    Cp = _round_up(C, LANE)
    ICp = _round_up(IC, LANE)

    # q-tile size: keep tile_n (MXU-sized) and PAD N up to a multiple of it (no divisor
    # fallback); if N is smaller than tile_n, use one tile rounded to the bf16 sublane.
    tn = tile_n
    if N < tn:
        tn = max(_round_up(N, 16), 16)
    N_pad = _round_up(N, tn)

    # ---- glue: NCHW -> NHWC -> pool-group token order, padded to lane width + tile rows.
    x_nhwc = jnp.transpose(x_nchw, (0, 2, 3, 1))                          # (B, H, W, C)
    x_grp = (x_nhwc.reshape(B, Hs, 2, Ws, 2, C)
             .transpose(0, 2, 4, 1, 3, 5)                                 # (B, 2, 2, Hs, Ws, C)
             .reshape(B, 4 * Nsub, C))
    x_grp = jnp.pad(x_grp, ((0, 0), (0, N_pad - N), (0, Cp - C)))         # (B, N_pad, Cp)
    x_grp = x_grp.astype(jnp.bfloat16)

    # ---- glue: fold inference BatchNorm into the W conv; coalesce params into 4 arrays.
    bn_scale = params["bn_gamma"] * jax.lax.rsqrt(params["bn_var"] + BN_EPS)      # (C,)
    w_out_f = params["W_w"] * bn_scale[None, :]                                   # (IC, C)
    b_out_f = params["bn_beta"] + (params["W_b"] - params["bn_mean"]) * bn_scale  # (C,)

    def pad2(a, r, c):
        return jnp.pad(a, ((0, r - a.shape[0]), (0, c - a.shape[1])))

    def pad1(a, n):
        return jnp.pad(a, (0, n - a.shape[0]))

    w_in = jnp.concatenate([pad2(params["theta_w"], Cp, ICp),
                            pad2(params["phi_w"], Cp, ICp),
                            pad2(params["g_w"], Cp, ICp)],
                           axis=1).astype(jnp.bfloat16)                           # (Cp, 3*ICp)
    b_in = jnp.concatenate([pad1(params["theta_b"], ICp),
                            pad1(params["phi_b"], ICp),
                            pad1(params["g_b"], ICp)])[None, :]                   # (1, 3*ICp) f32
    w_out = pad2(w_out_f, ICp, Cp).astype(jnp.bfloat16)                           # (ICp, Cp)
    b_out = pad1(b_out_f, Cp)[None, :]                                            # (1, Cp)  f32

    kernel = functools.partial(_nonlocal_kernel, Nsub, ICp, tn)
    vmem_limit = _vmem_limit_bytes(N_pad, Cp, ICp, Nsub, tn)

    z_grp = pl.pallas_call(
        kernel,
        out_shape=jax.ShapeDtypeStruct((B, N_pad, Cp), jnp.float32),
        grid_spec=pltpu.PrefetchScalarGridSpec(
            num_scalar_prefetch=0,
            grid=(B, N_pad // tn),
            in_specs=[
                # Full per-batch token block: index depends only on b, so Pallas fetches
                # it once per batch; q-tiles are VMEM slices of this resident block.
                pl.BlockSpec((1, N_pad, Cp), lambda b, n: (b, 0, 0)),
                pl.BlockSpec((Cp, 3 * ICp), lambda b, n: (0, 0)),
                pl.BlockSpec((1, 3 * ICp), lambda b, n: (0, 0)),
                pl.BlockSpec((ICp, Cp), lambda b, n: (0, 0)),
                pl.BlockSpec((1, Cp), lambda b, n: (0, 0)),
            ],
            out_specs=pl.BlockSpec((1, tn, Cp), lambda b, n: (b, n, 0)),
            scratch_shapes=[pltpu.VMEM((ICp, Nsub), jnp.bfloat16),   # phi^T cache
                            pltpu.VMEM((Nsub, ICp), jnp.bfloat16)],  # g cache
        ),
        # N-tile axis must be "arbitrary": phi/g scratch is filled at n == 0 of each
        # batch and reused by the later tiles.  The batch axis is megacore-parallel.
        compiler_params=pltpu.CompilerParams(
            dimension_semantics=("parallel", "arbitrary"),
            vmem_limit_bytes=vmem_limit),
    )(x_grp, w_in, b_in, w_out, b_out)

    # ---- glue: crop N/channel padding, invert the pool-group permutation, back to NCHW.
    z_nhwc = (z_grp[:, :N, :C]
              .reshape(B, 2, 2, Hs, Ws, C)
              .transpose(0, 3, 1, 4, 2, 5)
              .reshape(B, H, W, C))
    return jnp.transpose(z_nhwc, (0, 3, 1, 2))


def nonlocal_block_reference(x_nchw, params):
    """Pure-JAX f32 reference with the exact forward semantics of the torch module."""
    B, C, H, W = x_nchw.shape
    IC = params["theta_w"].shape[1]
    x = jnp.transpose(x_nchw, (0, 2, 3, 1))                      # (B, H, W, C)
    x_tok = x.reshape(B, -1, C)

    theta = x_tok @ params["theta_w"] + params["theta_b"]        # (B, N, IC)
    phi_full = x @ params["phi_w"] + params["phi_b"]             # (B, H, W, IC)
    g_full = x @ params["g_w"] + params["g_b"]

    def pool(a):
        return jnp.max(a.reshape(B, H // 2, 2, W // 2, 2, IC),
                       axis=(2, 4)).reshape(B, -1, IC)

    phi_p = pool(phi_full)
    g_p = pool(g_full)
    f = jnp.einsum('bni,bmi->bnm', theta, phi_p)
    p = jax.nn.softmax(f, axis=-1)
    y = jnp.einsum('bnm,bmi->bni', p, g_p)
    wy = y @ params["W_w"] + params["W_b"]
    bn = params["bn_gamma"] * (wy - params["bn_mean"]) * \
        jax.lax.rsqrt(params["bn_var"] + BN_EPS) + params["bn_beta"]
    z = (bn + x_tok).reshape(B, H, W, C).transpose(0, 3, 1, 2)
    return z


def init_params(key, C, IC, *, randomize_bn=True):
    ks = jax.random.split(key, 12)
    sc = 1.0 / np.sqrt(C)
    sw = 1.0 / np.sqrt(IC)
    p = {
        # conv weights in matmul form: (in_ch, out_ch) == torch weight[:, :, 0, 0].T
        "theta_w": jax.random.uniform(ks[0], (C, IC), jnp.float32, -sc, sc),
        "theta_b": jax.random.uniform(ks[1], (IC,), jnp.float32, -sc, sc),
        "phi_w":   jax.random.uniform(ks[2], (C, IC), jnp.float32, -sc, sc),
        "phi_b":   jax.random.uniform(ks[3], (IC,), jnp.float32, -sc, sc),
        "g_w":     jax.random.uniform(ks[4], (C, IC), jnp.float32, -sc, sc),
        "g_b":     jax.random.uniform(ks[5], (IC,), jnp.float32, -sc, sc),
        "W_w":     jax.random.uniform(ks[6], (IC, C), jnp.float32, -sw, sw),
        "W_b":     jax.random.uniform(ks[7], (C,), jnp.float32, -sw, sw),
    }
    if randomize_bn:
        # The torch module's __init__ zeros gamma/beta (so z == x exactly at init); we
        # use non-trivial BN parameters so the test exercises the W + BN + residual path.
        p["bn_gamma"] = jax.random.normal(ks[8], (C,), jnp.float32)
        p["bn_beta"] = jax.random.normal(ks[9], (C,), jnp.float32)
        p["bn_mean"] = jax.random.normal(ks[10], (C,), jnp.float32)
        p["bn_var"] = jax.random.uniform(ks[11], (C,), jnp.float32, 0.5, 1.5)
    else:
        p["bn_gamma"] = jnp.zeros((C,), jnp.float32)
        p["bn_beta"] = jnp.zeros((C,), jnp.float32)
        p["bn_mean"] = jnp.zeros((C,), jnp.float32)
        p["bn_var"] = jnp.ones((C,), jnp.float32)
    return p


if __name__ == "__main__":
    key = jax.random.PRNGKey(0)
    kx, kp = jax.random.split(key)

    B, C, H, W = 2, 4, 16, 16          # in_channels=4 -> inter_channels=2
    IC = max(C // 2, 1)

    x = jax.random.normal(kx, (B, C, H, W), jnp.float32)
    params = init_params(kp, C, IC)

    z = nonlocal_block_pallas(x, params)
    z = jax.block_until_ready(z)

    z_ref = nonlocal_block_reference(x, params)
    # bf16 matmul operands (x / weights / attention operands): relaxed tolerance.
    np.testing.assert_allclose(np.asarray(z), np.asarray(z_ref), rtol=2e-2, atol=2e-2)

    print("KERNEL_OK")
</pallas_src>

<mosaic_0001>
module attributes {stable_mosaic.version = 11 : i64} {
  func.func @_nonlocal_kernel(%arg0: i32, %arg1: i32, %arg2: memref<1x256x128xbf16, #tpu.memory_space<vmem>>, %arg3: memref<128x384xbf16, #tpu.memory_space<vmem>>, %arg4: memref<1x384xf32, #tpu.memory_space<vmem>>, %arg5: memref<128x128xbf16, #tpu.memory_space<vmem>>, %arg6: memref<1x128xf32, #tpu.memory_space<vmem>>, %arg7: memref<1x256x128xf32, #tpu.memory_space<vmem>>, %arg8: memref<128x64xbf16, #tpu.memory_space<vmem>>, %arg9: memref<64x128xbf16, #tpu.memory_space<vmem>>) attributes {dimension_semantics = [#tpu.dimension_semantics<parallel>, #tpu.dimension_semantics<arbitrary>], iteration_bounds = array<i64: 2, 1>, scalar_prefetch = 0 : i64, scratch_operands = 2 : i64, tpu.core_type = #tpu.core_type<tc>, window_params = [{transform_indices = @transform_0, window_bounds = array<i64: 1, 256, 128>}, {pipeline_mode = #tpu.pipeline_mode<synchronous>, transform_indices = @transform_1, window_bounds = array<i64: 128, 384>}, {pipeline_mode = #tpu.pipeline_mode<synchronous>, transform_indices = @transform_2, window_bounds = array<i64: 1, 384>}, {pipeline_mode = #tpu.pipeline_mode<synchronous>, transform_indices = @transform_3, window_bounds = array<i64: 128, 128>}, {pipeline_mode = #tpu.pipeline_mode<synchronous>, transform_indices = @transform_4, window_bounds = array<i64: 1, 128>}, {transform_indices = @transform_5, window_bounds = array<i64: 1, 256, 128>}]} {
    %c0_i32 = arith.constant 0 : i32
    %0 = arith.cmpi eq, %arg1, %c0_i32 : i32
    %1 = arith.extui %0 : i1 to i32
    %c0_i32_0 = arith.constant 0 : i32
    %2 = arith.cmpi ne, %1, %c0_i32_0 : i32
    scf.if %2 {
      %c0_22 = arith.constant 0 : index
      %c0_23 = arith.constant 0 : index
      %c0_24 = arith.constant 0 : index
      %40 = vector.load %arg2[%c0_22, %c0_23, %c0_24] : memref<1x256x128xbf16, #tpu.memory_space<vmem>>, vector<1x256x128xbf16>
      %41 = vector.shape_cast %40 : vector<1x256x128xbf16> to vector<256x128xbf16>
      %c0_25 = arith.constant 0 : index
      %c128 = arith.constant 128 : index
      %42 = vector.load %arg3[%c0_25, %c128] : memref<128x384xbf16, #tpu.memory_space<vmem>>, vector<128x256xbf16>
      %cst_26 = arith.constant dense<0.000000e+00> : vector<256x256xf32>
      %43 = tpu.matmul %41, %42, %cst_26 {dimension_numbers = #tpu.dot_dimension_numbers<[1], [0], [0], [1], [0, 0, 1, 1], [], []>} : vector<256x128xbf16>, vector<128x256xbf16>, vector<256x256xf32> -> vector<256x256xf32>
      %c0_27 = arith.constant 0 : index
      %c128_28 = arith.constant 128 : index
      %44 = vector.load %arg4[%c0_27, %c128_28] : memref<1x384xf32, #tpu.memory_space<vmem>>, vector<1x256xf32>
      %45 = vector.broadcast %44 : vector<1x256xf32> to vector<256x256xf32>
      %46 = arith.addf %43, %45 : vector<256x256xf32>
      %47 = vector.extract_strided_slice %46 {offsets = [0, 0], sizes = [64, 256], strides = [1, 1]} : vector<256x256xf32> to vector<64x256xf32>
      %48 = vector.extract_strided_slice %46 {offsets = [64, 0], sizes = [64, 256], strides = [1, 1]} : vector<256x256xf32> to vector<64x256xf32>
      %49 = arith.maximumf %47, %48 : vector<64x256xf32>
      %50 = vector.extract_strided_slice %46 {offsets = [128, 0], sizes = [64, 256], strides = [1, 1]} : vector<256x256xf32> to vector<64x256xf32>
      %51 = vector.extract_strided_slice %46 {offsets = [192, 0], sizes = [64, 256], strides = [1, 1]} : vector<256x256xf32> to vector<64x256xf32>
      %52 = arith.maximumf %50, %51 : vector<64x256xf32>
      %53 = arith.maximumf %49, %52 : vector<64x256xf32>
      %54 = vector.extract_strided_slice %53 {offsets = [0, 0], sizes = [64, 128], strides = [1, 1]} : vector<64x256xf32> to vector<64x128xf32>
      %55 = tpu.transpose %54, [1, 0] : vector<64x128xf32> -> vector<128x64xf32>
      %56 = arith.truncf %55 : vector<128x64xf32> to vector<128x64xbf16>
      %c0_29 = arith.constant 0 : index
      %c0_30 = arith.constant 0 : index
      %57 = vector.load %arg8[%c0_29, %c0_30] : memref<128x64xbf16, #tpu.memory_space<vmem>>, vector<128x64xbf16>
      tpu.vector_store %arg8[%c0_29, %c0_30], %56 {strides = array<i32>} : memref<128x64xbf16, #tpu.memory_space<vmem>>, vector<128x64xbf16>,
      %58 = vector.extract_strided_slice %53 {offsets = [0, 128], sizes = [64, 128], strides = [1, 1]} : vector<64x256xf32> to vector<64x128xf32>
      %59 = arith.truncf %58 : vector<64x128xf32> to vector<64x128xbf16>
      %c0_31 = arith.constant 0 : index
      %c0_32 = arith.constant 0 : index
      %60 = vector.load %arg9[%c0_31, %c0_32] : memref<64x128xbf16, #tpu.memory_space<vmem>>, vector<64x128xbf16>
      tpu.vector_store %arg9[%c0_31, %c0_32], %59 {strides = array<i32>} : memref<64x128xbf16, #tpu.memory_space<vmem>>, vector<64x128xbf16>,
    } else {
    }
    %c256_i32 = arith.constant 256 : i32
    %3 = arith.muli %arg1, %c256_i32 : i32
    %4 = tpu.assume_multiple %3, 256 : i32
    %c0 = arith.constant 0 : index
    %5 = arith.index_cast %4 : i32 to index
    %c0_1 = arith.constant 0 : index
    %6 = vector.load %arg2[%c0, %5, %c0_1] : memref<1x256x128xbf16, #tpu.memory_space<vmem>>, vector<1x256x128xbf16>
    %7 = vector.shape_cast %6 : vector<1x256x128xbf16> to vector<256x128xbf16>
    %c0_2 = arith.constant 0 : index
    %c0_3 = arith.constant 0 : index
    %8 = vector.load %arg3[%c0_2, %c0_3] : memref<128x384xbf16, #tpu.memory_space<vmem>>, vector<128x128xbf16>
    %cst = arith.constant dense<0.000000e+00> : vector<256x128xf32>
    %9 = tpu.matmul %7, %8, %cst {dimension_numbers = #tpu.dot_dimension_numbers<[1], [0], [0], [1], [0, 0, 1, 1], [], []>} : vector<256x128xbf16>, vector<128x128xbf16>, vector<256x128xf32> -> vector<256x128xf32>
    %c0_4 = arith.constant 0 : index
    %c0_5 = arith.constant 0 : index
    %10 = vector.load %arg4[%c0_4, %c0_5] : memref<1x384xf32, #tpu.memory_space<vmem>>, vector<1x128xf32>
    %11 = vector.broadcast %10 : vector<1x128xf32> to vector<256x128xf32>
    %12 = arith.addf %9, %11 : vector<256x128xf32>
    %13 = arith.truncf %12 : vector<256x128xf32> to vector<256x128xbf16>
    %c0_6 = arith.constant 0 : index
    %c0_7 = arith.constant 0 : index
    %14 = vector.load %arg8[%c0_6, %c0_7] : memref<128x64xbf16, #tpu.memory_space<vmem>>, vector<128x64xbf16>
    %cst_8 = arith.constant dense<0.000000e+00> : vector<256x64xf32>
    %15 = tpu.matmul %13, %14, %cst_8 {dimension_numbers = #tpu.dot_dimension_numbers<[1], [0], [0], [1], [0, 0, 1, 1], [], []>} : vector<256x128xbf16>, vector<128x64xbf16>, vector<256x64xf32> -> vector<256x64xf32>
    %cst_9 = arith.constant dense<0xFF800000> : vector<256xf32>
    %16 = vector.multi_reduction <maximumf>, %15, %cst_9 [1] : vector<256x64xf32> to vector<256xf32>
    %17 = vector.shape_cast %16 : vector<256xf32> to vector<256x1xf32>
    %18 = vector.broadcast %17 : vector<256x1xf32> to vector<256x64xf32>
    %19 = arith.subf %15, %18 : vector<256x64xf32>
    %20 = math.exp %19 : vector<256x64xf32>
    %cst_10 = arith.constant dense<0.000000e+00> : vector<256xf32>
    %21 = vector.multi_reduction <add>, %20, %cst_10 [1] : vector<256x64xf32> to vector<256xf32>
    %22 = vector.shape_cast %21 : vector<256xf32> to vector<256x1xf32>
    %23 = tpu.reciprocal %22 : vector<256x1xf32> -> vector<256x1xf32>
    %24 = arith.truncf %20 : vector<256x64xf32> to vector<256x64xbf16>
    %c0_11 = arith.constant 0 : index
    %c0_12 = arith.constant 0 : index
    %25 = vector.load %arg9[%c0_11, %c0_12] : memref<64x128xbf16, #tpu.memory_space<vmem>>, vector<64x128xbf16>
    %cst_13 = arith.constant dense<0.000000e+00> : vector<256x128xf32>
    %26 = tpu.matmul %24, %25, %cst_13 {dimension_numbers = #tpu.dot_dimension_numbers<[1], [0], [0], [1], [0, 0, 1, 1], [], []>} : vector<256x64xbf16>, vector<64x128xbf16>, vector<256x128xf32> -> vector<256x128xf32>
    %27 = vector.broadcast %23 : vector<256x1xf32> to vector<256x128xf32>
    %28 = arith.mulf %26, %27 : vector<256x128xf32>
    %29 = arith.truncf %28 : vector<256x128xf32> to vector<256x128xbf16>
    %c0_14 = arith.constant 0 : index
    %c0_15 = arith.constant 0 : index
    %30 = vector.load %arg5[%c0_14, %c0_15] : memref<128x128xbf16, #tpu.memory_space<vmem>>, vector<128x128xbf16>
    %cst_16 = arith.constant dense<0.000000e+00> : vector<256x128xf32>
    %31 = tpu.matmul %29, %30, %cst_16 {dimension_numbers = #tpu.dot_dimension_numbers<[1], [0], [0], [1], [0, 0, 1, 1], [], []>} : vector<256x128xbf16>, vector<128x128xbf16>, vector<256x128xf32> -> vector<256x128xf32>
    %c0_17 = arith.constant 0 : index
    %c0_18 = arith.constant 0 : index
    %32 = vector.load %arg6[%c0_17, %c0_18] : memref<1x128xf32, #tpu.memory_space<vmem>>, vector<1x128xf32>
    %33 = vector.broadcast %32 : vector<1x128xf32> to vector<256x128xf32>
    %34 = arith.addf %31, %33 : vector<256x128xf32>
    %35 = arith.extf %7 : vector<256x128xbf16> to vector<256x128xf32>
    %36 = arith.addf %34, %35 : vector<256x128xf32>
    %c0_19 = arith.constant 0 : index
    %c0_20 = arith.constant 0 : index
    %c0_21 = arith.constant 0 : index
    %37 = vector.load %arg7[%c0_19, %c0_20, %c0_21] : memref<1x256x128xf32, #tpu.memory_space<vmem>>, vector<1x256x128xf32>
    %38 = vector.shape_cast %37 : vector<1x256x128xf32> to vector<256x128xf32>
    %39 = vector.shape_cast %36 : vector<256x128xf32> to vector<1x256x128xf32>
    tpu.vector_store %arg7[%c0_19, %c0_20, %c0_21], %39 {strides = array<i32>} : memref<1x256x128xf32, #tpu.memory_space<vmem>>, vector<1x256x128xf32>,
    return
  }
  func.func @transform_0(%arg0: i32, %arg1: i32) -> (i32, i32, i32) {
    %c0_i32 = arith.constant 0 : i32
    %c0_i32_0 = arith.constant 0 : i32
    %c0_i32_1 = arith.constant 0 : i32
    return %arg0, %c0_i32, %c0_i32_0 : i32, i32, i32
  }
  func.func @transform_1(%arg0: i32, %arg1: i32) -> (i32, i32) {
    %c0_i32 = arith.constant 0 : i32
    %c0_i32_0 = arith.constant 0 : i32
    %c0_i32_1 = arith.constant 0 : i32
    return %c0_i32, %c0_i32_0 : i32, i32
  }
  func.func @transform_2(%arg0: i32, %arg1: i32) -> (i32, i32) {
    %c0_i32 = arith.constant 0 : i32
    %c0_i32_0 = arith.constant 0 : i32
    %c0_i32_1 = arith.constant 0 : i32
    return %c0_i32, %c0_i32_0 : i32, i32
  }
  func.func @transform_3(%arg0: i32, %arg1: i32) -> (i32, i32) {
    %c0_i32 = arith.constant 0 : i32
    %c0_i32_0 = arith.constant 0 : i32
    %c0_i32_1 = arith.constant 0 : i32
    return %c0_i32, %c0_i32_0 : i32, i32
  }
  func.func @transform_4(%arg0: i32, %arg1: i32) -> (i32, i32) {
    %c0_i32 = arith.constant 0 : i32
    %c0_i32_0 = arith.constant 0 : i32
    %c0_i32_1 = arith.constant 0 : i32
    return %c0_i32, %c0_i32_0 : i32, i32
  }
  func.func @transform_5(%arg0: i32, %arg1: i32) -> (i32, i32, i32) {
    %c0_i32 = arith.constant 0 : i32
    %c0_i32_0 = arith.constant 0 : i32
    return %arg0, %arg1, %c0_i32 : i32, i32, i32
  }
}

</mosaic_0001>

<bundles_post_ra>
// kernel: tpu_custom_call.1
= control target key start
LH: loop header
LB: loop body
LE: loop exit
PB: predicated region body
PF: predicated region fallthrough
CT: control target
= control target key end

     0   :  { %s4467_s0 = inlined_call_operand.hbm [shape: bf16[2,256,128], index: 0, kind: input, shape index: {}]   ;;  %s4468_s1 = inlined_call_operand.hbm [shape: bf16[128,384], index: 1, kind: input, shape index: {}]   ;;  %s4469_s2 = inlined_call_operand.vmem [shape: f32[1,384], index: 2, kind: input, shape index: {}]   ;;  %s4470_s3 = inlined_call_operand.hbm [shape: bf16[128,128], index: 3, kind: input, shape index: {}]   ;;  %s4471_s4 = inlined_call_operand.vmem [shape: f32[1,128], index: 4, kind: input, shape index: {}]   ;;  %s4472_s5 = inlined_call_operand.hbm [shape: f32[2,256,128], index: 5, kind: output, shape index: {}]  }
   0x1   :  { %4479 = sst [smem:[#allocation15_spill]] %s4468_s1 }
   0x2   :  { %10 = vsyncpa [#allocation5], 0 }
   0x3   :  { %12 = vsyncpa [#allocation5 + $0x1], 0 }
   0x4   :  { %13 = vsyncpa [#allocation8], 0 }
   0x5   :  { %14 = vsyncpa [#allocation6], 0 }
   0x6   :  { %16 = vsyncpa [#allocation6 + $0x1], 0  ;;  %s3607_s18 = smov 0   ;;  %s3609_s19 = smov 0  }
   0x7   :  { %s3611_s20 = smov 0   ;;  %s3613_s21 = smov 0  }
   0x8   :  { %s3615_s22 = smov 0   ;;  %s3617_s23 = smov 0  }
   0x9 LB: > { %s2603_s24 = sadd.s32 4294967295, %s3564_s23   ;;  %s2604_s25 = sadd.s32 4294967294, %s3564_s23   ;;  %s3564_s23 = sphi %s3617_s23, %s22_s23   ;;  %s3560_s22 = sphi %s3615_s22, %s4516_s22   ;;  %s3556_s21 = sphi %s3613_s21, %s4515_s21   ;;  %s3552_s20 = sphi %s3611_s20, %s4514_s20   ;;  %s3548_s19 = sphi %s3609_s19, %s4513_s19   ;;  %s3544_s18 = sphi %s3607_s18, %s4512_s18  }
   0xa   : > { %p54_p0 = scmp.ne.s32.totalorder %s3548_s19, %s3544_s18  ;;  %p3641_p1 = scmp.eq.s32.totalorder %s2603_s24, 0 }
   0xb   : > { %p3645_p2 = scmp.eq.s32.totalorder %s2603_s24, 1  ;;  %p170_p3 = scmp.eq.s32.totalorder %s2604_s25, 1 }
   0xc   : > { %s4480_s26 = scalar_select %p3641_p1, 1, 0 }
   0xd   : > { %p3651_p4 = por %p3641_p1, %p54_p0  ;;  %p2605_p5 = scmp.ge.s32.totalorder %s3564_s23, 1 }
   0xe   : > { %p3656_p6 = por %p170_p3, %p54_p0  ;;  %p177_p7 = scmp.lt.s32.totalorder %s3564_s23, 3 }
   0xf   : > { %s4482_s28 = scalar_select %p3651_p4, 1, 0 }
  0x10   : > { %s4483_s29 = scalar_select %p3656_p6, 1, 0 }
  0x11   : > { %p3661_p8 = pnand %p2605_p5, %p177_p7  ;;  %s3566_s6 = smov [#allocation7]  }
  0x12   : > { %s189_s7 = sshll.u32 %s3566_s6, 4  ;;  %s3567_s9 = smov [#allocation9]   ;;  %s190_s7 = int_to_ptr.vmem [resolvable:$true] %s189_s7 }
  0x13   : > { %p3077_p9 = pneg %p3661_p8  ;;  %s205_s10 = sshll.u32 %s3567_s9, 4  ;;  %s206_s10 = int_to_ptr.vmem [resolvable:$true] %s205_s10 }
  0x14   : > { %s3411_s11 = scalar_lea.vmem %s190_s7, 3072  ;;  %p3419_p5 = scmp.lt.s32.totalorder %s190_s7, %s190_s7 }
  0x15   : > { %p3670_p11 = pnand %p3077_p9, %p3641_p1  ;;  %p3412_p13 = scmp.ne.s32.totalorder %s190_s7, %s3411_s11 }
  0x16   : > { %p3420_p7 = scmp.lt.s32.totalorder %s3411_s11, %s3411_s11 }
  0x17   : > { %p3402_p12 = pneg %p3670_p11 }
  0x18   : > { %p3421_p10 = por %p3420_p7, %p3419_p5 }
  0x19   : > { %p3414_p0 = pnand %p3412_p13, %p3402_p12 }
  0x1b   : > { %p3415_p3 = pneg %p3414_p0 }
  0x1d   : > { %p3422_p9 = pnand %p3421_p10, %p3415_p3 }
  0x1f   : > { %3425 = shalt.err (!%p3422_p9)
}
  0x20   : > { %s3568_s12 = smov 192   ;;  %s3569_s13 = smov 12  }
  0x21   : > { %s4486_s1 = sld [smem:[#allocation15_spill]]  ;;  %s3437_s16 = scalar_lea.vmem %s206_s10, 1024 }
  0x22   : > { %p3438_p6 = scmp.ne.s32.totalorder %s206_s10, %s3437_s16  ;;  %p3445_p1 = scmp.lt.s32.totalorder %s206_s10, %s206_s10 }
  0x23   : > { %p3446_p4 = scmp.lt.s32.totalorder %s3437_s16, %s3437_s16 }
  0x24   : > { %p3440_p13 = pnand %p3438_p6, %p3402_p12 }
  0x25   : > { %p3447_p5 = por %p3446_p4, %p3445_p1 }
  0x26   : > { %p3441_p0 = pneg %p3440_p13 }
  0x27   : > { %3080 = dma.hbm_to_vmem [thread:$0]  (!%p3670_p11), %s4486_s1, 3072, %s190_s7, [#allocation8], %s3568_s12, %s3568_s12, %s3569_s13  }
  0x28   : > { %p3448_p10 = pnand %p3447_p5, %p3441_p0 }
  0x2a   : > { %3451 = shalt.err (!%p3448_p10)
}
  0x2b   : > { %s4476_s17 = smov 64   ;;  %s4477_s24 = smov 4  }
  0x2c   : > { %3083 = dma.hbm_to_vmem [thread:$0]  (!%p3670_p11), %s4470_s3, 1024, %s206_s10, [#allocation8], %s4476_s17, %s4476_s17, %s4477_s24  }
  0x2d   : > { %s34_s7 = sadd.s32 1, %s3560_s22  ;;  %s41_s9 = sadd.s32 1, %s3552_s20 }
  0x2e   : > { %p36_p1 = scmp.ge.s32.totalorder %s34_s7, 2  ;;  %p48_p4 = scmp.ne.s32.totalorder %s3552_s20, %s3548_s19 }
  0x2f   : > { %p49_p6 = scmp.eq.s32.totalorder %s3564_s23, 0  ;;  %p3094_p12 = scmp.lt.s32.totalorder %s3564_s23, 2 }
  0x30   : > { %s4518_s7 = smov (%p36_p1, %s34_s7), 0  ;;  %p3705_p7 = por %p3645_p2, %p48_p4 }
  0x31   : > { %p50_p3 = por %p49_p6, %p48_p4  ;;  %s38_s11 = ssub.s32 %s3560_s22, %s4518_s7 }
  0x32   : > { %s222_s12 = sand.u32 1, %s3552_s20   ;;  %p39_p9 = scmp.eq.s32.totalorder %s38_s11, 0 }
  0x33   : > { %s2609_s10 = sshll.u32 %s222_s12, 7  ;;  %s2740_s13 = sshll.u32 %s3560_s22, 11 }
  0x34   : > { %s3714_s14 = scalar_select %p39_p9, %s3552_s20, %s41_s9  }
  0x35   : > { %s232_s25 = scalar_lea.hbm %s4467_s0, %s2740_s13  ;;  %s226_s6 = scalar_lea.vmem [#allocation4], %s2609_s10 }
  0x36   : > { %s233_s17 = sshll.u32 %s226_s6, 4  ;;  %p3721_p11 = pnand %p3094_p12, %p50_p3  ;;  %s234_s17 = int_to_ptr.vmem [resolvable:$true] %s233_s17 }
  0x37   : > { %s223_s24 = scalar_lea.sflag [#allocation5], %s222_s12  ;;  %s3465_s11 = scalar_lea.vmem %s234_s17, 2048 }
  0x38   : > { %p3454_p2 = pneg %p3721_p11  ;;  %p3466_p13 = scmp.ne.s32.totalorder %s234_s17, %s3465_s11 }
  0x39   : > { %s3572_s9 = smov [#allocation4]  }
  0x3a   : > { %p3468_p0 = pnand %p3466_p13, %p3454_p2  ;;  %s3470_s1 = sshll.u32 %s3572_s9, 4  ;;  %s3471_s1 = int_to_ptr.vmem [resolvable:$false] %s3470_s1 }
  0x3b   : > { %s3472_s13 = scalar_lea.vmem %s3471_s1, 4096  ;;  %p3473_p10 = scmp.lt.s32.totalorder %s234_s17, %s3471_s1 }
  0x3c   : > { %p3469_p5 = pneg %p3468_p0  ;;  %p3474_p1 = scmp.lt.s32.totalorder %s3472_s13, %s3465_s11 }
  0x3e   : > { %p3475_p4 = por %p3474_p1, %p3473_p10 }
  0x40   : > { %p3476_p6 = pnand %p3475_p4, %p3469_p5 }
  0x42   : > { %3479 = shalt.err (!%p3476_p6)
}
  0x43   : > { %s4489_s10 = smov 4   ;;  %s4490_s15 = smov 64  }
  0x44   : > { %3087 = dma.hbm_to_vmem [thread:$0]  (!%p3721_p11), %s232_s25, 2048, %s234_s17, %s223_s24, %s4490_s15, %s4490_s15, %s4489_s10  }
  0x45   : > { %245 = sbr.rel (%p3661_p8) target bundleno = 1521 (0x5f1), region = 40 }
  0x4a   : > { %s3735_s12 = sand.u32 1, %s3548_s19   ;;  %p4491_p12 = scmp.ne.s32.totalorder %s4482_s28, 0 }
  0x4b   : > { %s2613_s1 = sshll.u32 %s3735_s12, 7  ;;  %s248_s16 = scalar_lea.sflag [#allocation5], %s3735_s12 }
  0x4c   : > { %s3739_s6 = scalar_lea.vmem [#allocation4], %s2613_s1 }
  0x4d   : > { %3531 = dma.done.wait (%p4491_p12), %s248_s16, 2048  }
  0x4e   : > { %3533 = vsyncadd (%p4491_p12), %s248_s16, 4294965248  ;;  %p4492_p3 = scmp.ne.s32.totalorder %s4480_s26, 0 }
  0x50   : > { %3535 = dma.done.wait (%p4492_p3), [#allocation8], 4096  }
  0x51   : > { %3537 = vsyncadd (%p4492_p3), [#allocation8], 4294963200  ;;  %v3573_v0 = vmov 0   ;;  %v3156_v1 = vld [vmem:[#allocation7 + $0xb0] ss:$12 sps:$4 sm:$0xff]   ;;  %v3180_v17 = vld [vmem:[%s3739_s6] sm:$0xff]   ;;  %v342_v56 = vlaneseq }
  0x52   : > { %560 = vmatprep.mubr.bf16.mxu0 %v3573_v0  ;;  %v3158_v2 = vld [vmem:[#allocation7 + $0xac] ss:$12 sps:$4 sm:$0xff]   ;;  %528 = vmatprep.subr.bf16.mxu0 %v3156_v1  ;;  %v3161_v4 = vld [vmem:[#allocation7 + $0x94] ss:$12 sps:$4 sm:$0xff]   ;;  %v3164_v6 = vld [vmem:[#allocation7 + $0x7c] ss:$12 sps:$4 sm:$0xff]  }
  0x53   : > { %v3159_v3 = vld [vmem:[#allocation7 + $0x98] ss:$12 sps:$4 sm:$0xff]   ;;  %529 = vmatpush1.bf16.msra.mxu0 %v3158_v2  ;;  %v3162_v5 = vld [vmem:[#allocation7 + $0x80] ss:$12 sps:$4 sm:$0xff]   ;;  %v3165_v7 = vld [vmem:[#allocation7 + $0x68] ss:$12 sps:$4 sm:$0xff]  }
  0x54   : > { %530 = vmatprep.subr.bf16.mxu0 %v3159_v3  ;;  %v3167_v8 = vld [vmem:[#allocation7 + $0x64] ss:$12 sps:$4 sm:$0xff]   ;;  %v3170_v10 = vld [vmem:[#allocation7 + $0x4c] ss:$12 sps:$4 sm:$0xff]   ;;  %v3173_v12 = vld [vmem:[#allocation7 + $0x34] ss:$12 sps:$4 sm:$0xff]  }
  0x55   : > { %v3168_v9 = vld [vmem:[#allocation7 + $0x50] ss:$12 sps:$4 sm:$0xff]   ;;  %v3171_v11 = vld [vmem:[#allocation7 + $0x38] ss:$12 sps:$4 sm:$0xff]   ;;  %v3174_v13 = vld [vmem:[#allocation7 + $0x20] ss:$12 sps:$4 sm:$0xff]  }
  0x56   : > { %v3176_v14 = vld [vmem:[#allocation7 + $0x1c] ss:$12 sps:$4 sm:$0xff]   ;;  %v3179_v16 = vld [vmem:[#allocation7 + $0x4] ss:$12 sps:$4 sm:$0xff]   ;;  %v3199_v36 = vld [vmem:[#allocation7 + $0x60] ss:$12 sps:$4 sm:$0xff]  }
  0x57   : > { %531 = vmatpush1.bf16.msra.mxu0 %v3161_v4  ;;  %v3177_v15 = vld [vmem:[#allocation7 + $0x8] ss:$12 sps:$4 sm:$0xff]   ;;  %v3183_v20 = vld [vmem:[%s3739_s6 + $0x18] sm:$0xff]   ;;  %v3184_v21 = vld [vmem:[%s3739_s6 + $0x20] sm:$0xff]   ;;  %v343_v61 = vshrl.u32 %v342_v56, 7  ;;  %vm865_vm0 = vcmask 519168  }
  0x58   : > { %532 = vmatprep.subr.bf16.mxu0 %v3162_v5  ;;  %v3181_v18 = vld [vmem:[%s3739_s6 + $0x8] sm:$0xff]   ;;  %v3182_v19 = vld [vmem:[%s3739_s6 + $0x10] sm:$0xff]   ;;  %v3187_v24 = vld [vmem:[%s3739_s6 + $0x38] sm:$0xff]   ;;  %vm1528_vm1 = vcmask 523264   ;;  %s2616_s27 = sshll.u32 %s3735_s12, 8  ;;  %s2765_s9 = sshll.u32 %s3556_s21, 12 }
  0x59   : > { %v3185_v22 = vld [vmem:[%s3739_s6 + $0x28] sm:$0xff]   ;;  %v3186_v23 = vld [vmem:[%s3739_s6 + $0x30] sm:$0xff]   ;;  %v3188_v25 = vld [vmem:[%s3739_s6 + $0x40] sm:$0xff]   ;;  %v348_v3 = vsub.s32 1, %v343_v61  ;;  %s4334_s11 = scalar_lea.vmem [#allocation10], %s2616_s27  ;;  %s4415_s1 = scalar_lea.hbm %s4472_s5, %s2765_s9 }
  0x5a   : > { %v3189_v26 = vld [vmem:[%s3739_s6 + $0x48] sm:$0xff]   ;;  %v3190_v27 = vld [vmem:[%s3739_s6 + $0x50] sm:$0xff]   ;;  %v3191_v28 = vld [vmem:[%s3739_s6 + $0x58] sm:$0xff]   ;;  %s2498_s13 = sshll.u32 %s4334_s11, 4  ;;  %s2483_s21 = scalar_lea.sflag [#allocation6], %s3735_s12  ;;  %s4417_s13 = int_to_ptr.vmem [resolvable:$true] %s2498_s13 }
  0x5b   : > { %533 = vmatpush1.bf16.msra.mxu0 %v3164_v6  ;;  %v3192_v29 = vld [vmem:[%s3739_s6 + $0x60] sm:$0xff]   ;;  %v3193_v30 = vld [vmem:[%s3739_s6 + $0x68] sm:$0xff]   ;;  %v3194_v31 = vld [vmem:[%s3739_s6 + $0x70] sm:$0xff]   ;;  %s3480_s16 = scalar_lea.vmem %s4417_s13, 4096 }
  0x5c   : > { %534 = vmatprep.subr.bf16.mxu0 %v3165_v7  ;;  %v3195_v32 = vld [vmem:[%s3739_s6 + $0x78] sm:$0xff]   ;;  %v3196_v33 = vld [vmem:[#allocation7 + $0xa8] ss:$12 sps:$4 sm:$0xff]   ;;  %v3203_v40 = vld [vmem:[#allocation7] ss:$12 sps:$4 sm:$0xff]   ;;  %p3481_p8 = scmp.ne.s32.totalorder %s4417_s13, %s3480_s16 }
  0x5d   : > { %2881 = vmatprep.subr.bf16.mxu1 %v3196_v33  ;;  %v3197_v34 = vld [vmem:[#allocation7 + $0x90] ss:$12 sps:$4 sm:$0xff]   ;;  %v3198_v35 = vld [vmem:[#allocation7 + $0x78] ss:$12 sps:$4 sm:$0xff]   ;;  %v3200_v37 = vld [vmem:[#allocation7 + $0x48] ss:$12 sps:$4 sm:$0xff]  }
  0x5e   : > { %2882 = vmatpush3.bf16.msra.mxu1 %v3196_v33  ;;  %v3201_v38 = vld [vmem:[#allocation7 + $0x30] ss:$12 sps:$4 sm:$0xff]   ;;  %v3202_v39 = vld [vmem:[#allocation7 + $0x18] ss:$12 sps:$4 sm:$0xff]   ;;  %v929_v42 = vld [vmem:[%s3739_s6 + $0x8] sm:$0xff]   ;;  %p3482_p9 = pnand %p3481_p8, %p3705_p7 }
  0x5f   : > { %535 = vmatpush1.bf16.msra.mxu0 %v3167_v8  ;;  %2883 = vmatprep.subr.bf16.mxu1 %v3197_v34  ;;  %v927_v41 = vld [vmem:[%s3739_s6] sm:$0xff]   ;;  %v931_v45 = vld [vmem:[%s3739_s6 + $0x10] sm:$0xff]   ;;  %v933_v47 = vld [vmem:[%s3739_s6 + $0x18] sm:$0xff]  }
  0x60   : > { %536 = vmatprep.subr.bf16.mxu0 %v3168_v9  ;;  %2897 = vmatprep.mubr.bf16.mxu1 %v927_v41  ;;  %v935_v49 = vld [vmem:[%s3739_s6 + $0x20] sm:$0xff]   ;;  %v937_v51 = vld [vmem:[%s3739_s6 + $0x28] sm:$0xff]   ;;  %v939_v58 = vld [vmem:[%s3739_s6 + $0x30] sm:$0xff]   ;;  %p3483_p11 = pneg %p3482_p9 }
  0x61   : > { %v941_v60 = vld [vmem:[%s3739_s6 + $0x38] sm:$0xff]   ;;  %v340_v1 = vld [vmem:[%s4469_s2 + $0x1] sm:$0x3]  ;;  %v945_v6 = vld [vmem:[%s3739_s6 + $0x48] sm:$0xff]  }
  0x62   : > { %2884 = vmatpush3.bf16.msra.mxu1 %v3197_v34  ;;  %v943_v4 = vld [vmem:[%s3739_s6 + $0x40] sm:$0xff]   ;;  %v947_v8 = vld [vmem:[%s3739_s6 + $0x50] sm:$0xff]  }
  0x63   : > { %537 = vmatpush1.bf16.msra.mxu0 %v3170_v10  ;;  %2885 = vmatprep.subr.bf16.mxu1 %v3198_v35  ;;  %v3813_v10 = vrot.slane %v340_v1, %v348_v3  ;;  %v955_v33 = vld [vmem:[%s3739_s6 + $0x70] sm:$0xff]  }
  0x64   : > { %538 = vmatprep.subr.bf16.mxu0 %v3171_v11 }
  0x66   : > { %2886 = vmatpush3.bf16.msra.mxu1 %v3198_v35 }
  0x67   : > { %539 = vmatpush1.bf16.msra.mxu0 %v3173_v12  ;;  %2887 = vmatprep.subr.bf16.mxu1 %v3199_v36  ;;  %v949_v12 = vld [vmem:[%s3739_s6 + $0x58] sm:$0xff]  }
  0x68   : > { %540 = vmatprep.subr.bf16.mxu0 %v3174_v13 }
  0x6a   : > { %2888 = vmatpush3.bf16.msra.mxu1 %v3199_v36 }
  0x6b   : > { %541 = vmatpush1.bf16.msra.mxu0 %v3176_v14  ;;  %2889 = vmatprep.subr.bf16.mxu1 %v3200_v37 }
  0x6c   : > { %542 = vmatprep.subr.bf16.mxu0 %v3177_v15  ;;  %v951_v15 = vld [vmem:[%s3739_s6 + $0x60] sm:$0xff]  }
  0x6e   : > { %2890 = vmatpush3.bf16.msra.mxu1 %v3200_v37 }
  0x6f   : > { %543 = vmatpush1.bf16.msra.mxu0 %v3179_v16  ;;  %2891 = vmatprep.subr.bf16.mxu1 %v3201_v38 }
  0x72   : > { %561 = vmatmul.mubr.bf16.vlgmr.msra.gmra.mxu0 %v3180_v17  ;;  %2892 = vmatpush3.bf16.msra.mxu1 %v3201_v38 }
  0x73   : > { %570 = vmatprep.mubr.bf16.mxu0 %v3573_v0  ;;  %2893 = vmatprep.subr.bf16.mxu1 %v3202_v39 }
  0x76   : > { %2894 = vmatpush3.bf16.msra.mxu1 %v3202_v39 }
  0x77   : > { %2895 = vmatprep.subr.bf16.mxu1 %v3203_v40 }
  0x7a   : > { %571 = vmatmul.mubr.bf16.gmra.mxu0 %v3181_v18  ;;  %2896 = vmatpush3.bf16.msra.mxu1 %v3203_v40 }
  0x7b   : > { %580 = vmatprep.mubr.bf16.mxu0 %v3573_v0 }
  0x7d   : > { %2898 = vmatmul.mubr.bf16.vlgmr.msra.gmra.mxu1 %v929_v42 }
  0x7e   : > { %2901 = vmatprep.mubr.bf16.mxu1 %v931_v45 }
  0x82   : > { %581 = vmatmul.mubr.bf16.gmra.mxu0 %v3182_v19 }
  0x83   : > { %590 = vmatprep.mubr.bf16.mxu0 %v3573_v0 }
  0x85   : > { %2902 = vmatmul.mubr.bf16.gmra.mxu1 %v933_v47  ;;  %v957_v47 = vld [vmem:[%s3739_s6 + $0x78] sm:$0xff]  }
  0x86   : > { %2905 = vmatprep.mubr.bf16.mxu1 %v935_v49 }
  0x8a   : > { %591 = vmatmul.mubr.bf16.gmra.mxu0 %v3183_v20 }
  0x8b   : > { %600 = vmatprep.mubr.bf16.mxu0 %v3573_v0 }
  0x8d   : > { %2906 = vmatmul.mubr.bf16.gmra.mxu1 %v937_v51 }
  0x8e   : > { %2909 = vmatprep.mubr.bf16.mxu1 %v939_v58 }
  0x92   : > { %601 = vmatmul.mubr.bf16.gmra.mxu0 %v3184_v21 }
  0x93   : > { %610 = vmatprep.mubr.bf16.mxu0 %v3573_v0 }
  0x95   : > { %2910 = vmatmul.mubr.bf16.gmra.mxu1 %v941_v60 }
  0x96   : > { %2913 = vmatprep.mubr.bf16.mxu1 %v943_v4 }
  0x9a   : > { %611 = vmatmul.mubr.bf16.gmra.mxu0 %v3185_v22 }
  0x9b   : > { %620 = vmatprep.mubr.bf16.mxu0 %v3573_v0 }
  0x9d   : > { %2914 = vmatmul.mubr.bf16.gmra.mxu1 %v945_v6 }
  0x9e   : > { %2917 = vmatprep.mubr.bf16.mxu1 %v947_v8 }
  0xa2   : > { %621 = vmatmul.mubr.bf16.gmra.mxu0 %v3186_v23 }
  0xa3   : > { %630 = vmatprep.mubr.bf16.mxu0 %v3573_v0 }
  0xa5   : > { %2918 = vmatmul.mubr.bf16.gmra.mxu1 %v949_v12 }
  0xa6   : > { %2921 = vmatprep.mubr.bf16.mxu1 %v951_v15 }
  0xaa   : > { %631 = vmatmul.mubr.bf16.gmra.mxu0 %v3187_v24 }
  0xab   : > { %640 = vmatprep.mubr.bf16.mxu0 %v3573_v0 }
  0xb2   : > { %641 = vmatmul.mubr.bf16.gmra.mxu0 %v3188_v25 }
  0xb3   : > { %650 = vmatprep.mubr.bf16.mxu0 %v3573_v0 }
  0xba   : > { %651 = vmatmul.mubr.bf16.gmra.mxu0 %v3189_v26 }
  0xbb   : > { %660 = vmatprep.mubr.bf16.mxu0 %v3573_v0 }
  0xc2   : > { %661 = vmatmul.mubr.bf16.gmra.mxu0 %v3190_v27 }
  0xc3   : > { %670 = vmatprep.mubr.bf16.mxu0 %v3573_v0 }
  0xca   : > { %671 = vmatmul.mubr.bf16.gmra.mxu0 %v3191_v28 }
  0xcb   : > { %680 = vmatprep.mubr.bf16.mxu0 %v3573_v0 }
  0xd2   : > { %681 = vmatmul.mubr.bf16.gmra.mxu0 %v3192_v29  ;;  %v953_v29 = vld [vmem:[%s3739_s6 + $0x68] sm:$0xff]  }
  0xd3   : > { %690 = vmatprep.mubr.bf16.mxu0 %v3573_v0  ;;  %2922 = vmatmul.mubr.bf16.gmra.mxu1 %v953_v29 }
  0xd4   : > { %2925 = vmatprep.mubr.bf16.mxu1 %v955_v33 }
  0xda   : > { %691 = vmatmul.mubr.bf16.gmra.mxu0 %v3193_v30 }
  0xdb   : > { %700 = vmatprep.mubr.bf16.mxu0 %v3573_v0  ;;  %2926 = vmatmul.mubr.bf16.gmra.mxu1 %v957_v47 }
  0xe2   : > { %701 = vmatmul.mubr.bf16.gmra.mxu0 %v3194_v31 }
  0xe3   : > { %710 = vmatprep.mubr.bf16.mxu0 %v3573_v0  ;;  %v344_v0 = vsub.s32 0, %v343_v61 }
  0xe5   : > { %v3808_v7 = vrot.slane %v340_v1, %v344_v0 }
  0xea   : > { %711 = vmatmul.mubr.bf16.gmra.mxu0 %v3195_v32 }
 0x132   : > { %v562_v43 = vpop.f32.mrf.mxu0 }
 0x133   : > { %v3817_v13 = vadd.f32 %v562_v43, %v3808_v7 }
 0x134   : > { %v564_v44 = vpop.f32.mrf.mxu0 }
 0x135   : > { %v3824_v17 = vadd.f32 %v564_v44, %v3813_v10 }
 0x136   : > { %v566_v46 = vpop.f32.mrf.mxu0 }
 0x137   : > { %v3832_v21 = vadd.f32 %v566_v46, %v3808_v7 }
 0x138   : > { %v568_v48 = vpop.f32.mrf.mxu0 }
 0x139   : > { %v3840_v25 = vadd.f32 %v568_v48, %v3813_v10 }
 0x13a   : > { %v572_v50 = vpop.f32.mrf.mxu0 }
 0x13b   : > { %v3849_v30 = vadd.f32 %v572_v50, %v3808_v7 }
 0x13c   : > { %v574_v52 = vpop.f32.mrf.mxu0 }
 0x13d   : > { %v3858_v35 = vadd.f32 %v574_v52, %v3813_v10 }
 0x13e   : > { %v576_v53 = vpop.f32.mrf.mxu0 }
 0x13f   : > { %v3866_v39 = vadd.f32 %v576_v53, %v3808_v7 }
 0x140   : > { %v578_v54 = vpop.f32.mrf.mxu0 }
 0x141   : > { %v3874_v43 = vadd.f32 %v578_v54, %v3813_v10 }
 0x142   : > { %v3787_v55 = vpop.f32.mrf.mxu0 }
 0x143   : > { %v3884_v48 = vadd.f32 %v3787_v55, %v3808_v7 }
 0x144   : > { %v3789_v57 = vpop.f32.mrf.mxu0 }
 0x145   : > { %v3893_v52 = vadd.f32 %v3789_v57, %v3813_v10 }
 0x146   : > { %v3792_v59 = vpop.f32.mrf.mxu0 }
 0x147   : > { %v3902_v55 = vadd.f32 %v3792_v59, %v3808_v7 }
 0x148   : > { %v3795_v62 = vpop.f32.mrf.mxu0 }
 0x149   : > { %v3911_v57 = vadd.f32 %v3795_v62, %v3813_v10 }
 0x14a   : > { %v3797_v63 = vpop.f32.mrf.mxu0 }
 0x14b   : > { %v3920_v3 = vadd.f32 %v3797_v63, %v3808_v7 }
 0x14c   : > { %v3802_v2 = vpop.f32.mrf.mxu0 }
 0x14d   : > { %v3929_v8 = vadd.f32 %v3802_v2, %v3813_v10 }
 0x14e   : > { %v3805_v5 = vpop.f32.mrf.mxu0 }
 0x14f   : > { %v3938_v63 = vadd.f32 %v3805_v5, %v3808_v7 }
 0x150   : > { %v3811_v9 = vpop.f32.mrf.mxu0 }
 0x151   : > { %v3947_v2 = vadd.f32 %v3811_v9, %v3813_v10 }
 0x152   : > { %v602_v11 = vpop.f32.mrf.mxu0 }
 0x153   : > { %v3820_v14 = vadd.f32 %v602_v11, %v3808_v7 }
 0x154   : > { %v604_v16 = vpop.f32.mrf.mxu0 }
 0x155   : > { %v3827_v18 = vadd.f32 %v604_v16, %v3813_v10  ;;  %v721_v19 = vmax.f32 %v3817_v13, %v3820_v14 }
 0x156   : > { %v606_v20 = vpop.f32.mrf.mxu0 }
 0x157   : > { %v3837_v23 = vadd.f32 %v606_v20, %v3808_v7  ;;  %v4495_v14 = vmax.f32 %v3824_v17, %v3827_v18 }
 0x158   : > { %v608_v24 = vpop.f32.mrf.mxu0 }
 0x159   : > { %v3845_v27 = vadd.f32 %v608_v24, %v3813_v10 }
 0x15a   : > { %v612_v28 = vpop.f32.mrf.mxu0 }
 0x15b   : > { %v3854_v32 = vadd.f32 %v612_v28, %v3808_v7 }
 0x15c   : > { %v614_v34 = vpop.f32.mrf.mxu0 }
 0x15d   : > { %v3863_v37 = vadd.f32 %v614_v34, %v3813_v10  ;;  %v4497_v17 = vmax.f32 %v3849_v30, %v3854_v32 }
 0x15e   : > { %v616_v38 = vpop.f32.mrf.mxu0 }
 0x15f   : > { %v3871_v41 = vadd.f32 %v616_v38, %v3808_v7 }
 0x160   : > { %v618_v42 = vpop.f32.mrf.mxu0 }
 0x161   : > { %v3879_v45 = vadd.f32 %v618_v42, %v3813_v10 }
 0x162   : > { %v622_v46 = vpop.f32.mrf.mxu0 }
 0x163   : > { %v3889_v50 = vadd.f32 %v622_v46, %v3808_v7 }
 0x164   : > { %v624_v51 = vpop.f32.mrf.mxu0 }
 0x165   : > { %v3898_v54 = vadd.f32 %v624_v51, %v3813_v10 }
 0x166   : > { %v626_v56 = vpop.f32.mrf.mxu0 }
 0x167   : > { %v3907_v60 = vadd.f32 %v626_v56, %v3808_v7 }
 0x168   : > { %v628_v61 = vpop.f32.mrf.mxu0 }
 0x169   : > { %v3916_v1 = vadd.f32 %v628_v61, %v3813_v10 }
 0x16a   : > { %v632_v59 = vpop.f32.mrf.mxu0 }
 0x16b   : > { %v3925_v6 = vadd.f32 %v632_v59, %v3808_v7 }
 0x16c   : > { %v634_v62 = vpop.f32.mrf.mxu0 }
 0x16d   : > { %v3934_v12 = vadd.f32 %v634_v62, %v3813_v10 }
 0x16e   : > { %v636_v15 = vpop.f32.mrf.mxu0 }
 0x16f   : > { %v3943_v20 = vadd.f32 %v636_v15, %v3808_v7 }
 0x170   : > { %v638_v24 = vpop.f32.mrf.mxu0 }
 0x171   : > { %v3952_v29 = vadd.f32 %v638_v24, %v3813_v10 }
 0x172   : > { %v642_v33 = vpop.f32.mrf.mxu0 }
 0x173   : > { %4493 = vst [vmem:[#allocation14_spill] sm:$0xff] %v3952_v29  ;;  %v643_v11 = vadd.f32 %v642_v33, %v3808_v7 }
 0x174   : > { %v644_v34 = vpop.f32.mrf.mxu0 }
 0x175   : > { %v645_v40 = vadd.f32 %v644_v34, %v3813_v10 }
 0x176   : > { %v646_v38 = vpop.f32.mrf.mxu0 }
 0x177   : > { %v647_v44 = vadd.f32 %v646_v38, %v3808_v7 }
 0x178   : > { %v648_v42 = vpop.f32.mrf.mxu0 }
 0x179   : > { %v649_v33 = vadd.f32 %v648_v42, %v3813_v10 }
 0x17a   : > { %v652_v46 = vpop.f32.mrf.mxu0 }
 0x17c   : > { %v654_v47 = vpop.f32.mrf.mxu0 }
 0x17e   : > { %v656_v51 = vpop.f32.mrf.mxu0 }
 0x180   : > { %v658_v56 = vpop.f32.mrf.mxu0 }
 0x182   : > { %v662_v61 = vpop.f32.mrf.mxu0 }
 0x184   : > { %v664_v9 = vpop.f32.mrf.mxu0 }
 0x186   : > { %v666_v59 = vpop.f32.mrf.mxu0 }
 0x188   : > { %v3956_v62 = vpop.f32.mrf.mxu0 }
 0x18a   : > { %v3958_v15 = vpop.f32.mrf.mxu0 }
 0x18c   : > { %v3960_v24 = vpop.f32.mrf.mxu0 }
 0x18e   : > { %v3962_v16 = vpop.f32.mrf.mxu0 }
 0x190   : > { %v3964_v28 = vpop.f32.mrf.mxu0 }
 0x192   : > { %v682_v5 = vpop.f32.mrf.mxu0 }
 0x193   : > { %v683_v4 = vadd.f32 %v682_v5, %v3808_v7 }
 0x194   : > { %v684_v58 = vpop.f32.mrf.mxu0 }
 0x195   : > { %v685_v0 = vadd.f32 %v684_v58, %v3813_v10  ;;  %v737_v53 = vmax.f32 %v643_v11, %v683_v4  ;;  %v653_v4 = vadd.f32 %v652_v46, %v3808_v7 }
 0x196   : > { %v686_v49 = vpop.f32.mrf.mxu0 }
 0x197   : > { %v687_v36 = vadd.f32 %v686_v49, %v3808_v7  ;;  %v753_v31 = vmax.f32 %v721_v19, %v737_v53  ;;  %v738_v26 = vmax.f32 %v645_v40, %v685_v0  ;;  %v4494_v49 = vmax.f32 %v3832_v21, %v3837_v23 }
 0x198   : > { %v688_v22 = vpop.f32.mrf.mxu0  ;;  %v657_v0 = vadd.f32 %v656_v51, %v3808_v7 }
 0x199   : > { %v739_v5 = vmax.f32 %v647_v44, %v687_v36  ;;  %v689_v29 = vadd.f32 %v688_v22, %v3813_v10  ;;  %769 = vxpose.xlu0.b32.start [1/8] (short) %v753_v31, 128  ;;  %v754_v19 = vmax.f32 %v4495_v14, %v738_v26  ;;  %v4496_v36 = vmax.f32 %v3840_v25, %v3845_v27 }
 0x19a   : > { %v692_v58 = vpop.f32.mrf.mxu0  ;;  %v655_v44 = vadd.f32 %v654_v47, %v3813_v10  ;;  %v659_v25 = vadd.f32 %v658_v56, %v3813_v10  ;;  %v663_v47 = vadd.f32 %v662_v61, %v3808_v7  ;;  %v4499_v56 = vmax.f32 %v3858_v35, %v3863_v37 }
 0x19b   : > { %v740_v11 = vmax.f32 %v649_v33, %v689_v29  ;;  %v693_v34 = vadd.f32 %v692_v58, %v3808_v7  ;;  %v755_v38 = vmax.f32 %v4494_v49, %v739_v5  ;;  %v4498_v5 = vmax.f32 %v3866_v39, %v3871_v41 }
 0x19c   : > { %v694_v13 = vpop.f32.mrf.mxu0  ;;  %v665_v61 = vadd.f32 %v664_v9, %v3813_v10  ;;  %v4501_v35 = vmax.f32 %v3884_v48, %v3889_v50  ;;  %v4502_v48 = vmax.f32 %v3902_v55, %v3907_v60  ;;  %v677_v55 = vadd.f32 %v3962_v16, %v3808_v7 }
 0x19d   : > { %v756_v22 = vmax.f32 %v4496_v36, %v740_v11  ;;  %v741_v31 = vmax.f32 %v653_v4, %v693_v34  ;;  %v695_v40 = vadd.f32 %v694_v13, %v3813_v10  ;;  %770 = vxpose.xlu0.b32.cont [2/8] (short) %v755_v38, 128  ;;  %v4500_v4 = vmax.f32 %v3874_v43, %v3879_v45 }
 0x19e   : > { %v696_v53 = vpop.f32.mrf.mxu0  ;;  %v667_v13 = vadd.f32 %v666_v59, %v3808_v7  ;;  %v669_v43 = vadd.f32 %v3956_v62, %v3813_v10  ;;  %v673_v59 = vadd.f32 %v3958_v15, %v3808_v7  ;;  %v4503_v62 = vmax.f32 %v3893_v52, %v3898_v54 }
 0x19f   : > { %v2769_v21 = vpack.c.bf16 %v756_v22, %v754_v19  ;;  %v697_v23 = vadd.f32 %v696_v53, %v3808_v7  ;;  %v757_v18 = vmax.f32 %v4497_v17, %v741_v31  ;;  %v742_v27 = vmax.f32 %v655_v44, %v695_v40 }
 0x1a0   : > { %v698_v26 = vpop.f32.mrf.mxu0  ;;  %v4504_v53 = vmax.f32 %v3911_v57, %v3916_v1  ;;  %v675_v15 = vadd.f32 %v3960_v24, %v3813_v10  ;;  %v4505_v52 = vmax.f32 %v3920_v3, %v3925_v6  ;;  %v679_v1 = vadd.f32 %v3964_v28, %v3813_v10  ;;  %v4508_v6 = vld [vmem:[#allocation14_spill] sm:$0xff] }
 0x1a1   : > { %2770 = vst [vmem:[#allocation3] sm:$0xff] %v2769_v21   ;;  %v743_v29 = vmax.f32 %v657_v0, %v697_v23  ;;  %v699_v42 = vadd.f32 %v698_v26, %v3813_v10  ;;  %771 = vxpose.xlu0.b32.cont [3/8] (short) %v757_v18, 128  ;;  %v758_v58 = vmax.f32 %v4499_v56, %v742_v27 }
 0x1a2   : > { %v702_v46 = vpop.f32.mrf.mxu0  ;;  %v4506_v16 = vmax.f32 %v3938_v63, %v3943_v20  ;;  %v4054_v20 = vld [vmem:[%s4469_s2] ss:$0 sm:$0xff] }
 0x1a3   : > { %v744_v51 = vmax.f32 %v659_v25, %v699_v42  ;;  %v703_v33 = vadd.f32 %v702_v46, %v3808_v7  ;;  %v759_v30 = vmax.f32 %v4498_v5, %v743_v29  ;;  %v4509_v42 = vmax.f32 %v3947_v2, %v4508_v6 }
 0x1a4   : > { %v704_v32 = vpop.f32.mrf.mxu0 }
 0x1a5   : > { %v760_v11 = vmax.f32 %v4500_v4, %v744_v51  ;;  %v745_v34 = vmax.f32 %v663_v47, %v703_v33  ;;  %v705_v49 = vadd.f32 %v704_v32, %v3813_v10  ;;  %772 = vxpose.xlu0.b32.cont [4/8] (short) %v759_v30, 128 }
 0x1a6   : > { %v706_v38 = vpop.f32.mrf.mxu0 }
 0x1a7   : > { %v2774_v39 = vpack.c.bf16 %v760_v11, %v758_v58  ;;  %v707_v41 = vadd.f32 %v706_v38, %v3808_v7  ;;  %v761_v37 = vmax.f32 %v4501_v35, %v745_v34  ;;  %v746_v45 = vmax.f32 %v665_v61, %v705_v49 }
 0x1a8   : > { %v708_v14 = vpop.f32.mrf.mxu0  ;;  %v3215_v63 = vld [vmem:[#allocation3] sm:$0xff]  }
 0x1a9   : > { %2786 = vst [vmem:[#allocation3 + $0x8] sm:$0xff] %v2774_v39   ;;  %v747_v19 = vmax.f32 %v667_v13, %v707_v41  ;;  %v709_v36 = vadd.f32 %v708_v14, %v3813_v10  ;;  %773 = vxpose.xlu0.b32.cont [5/8] (short) %v761_v37, 128  ;;  %v762_v44 = vmax.f32 %v4503_v62, %v746_v45 }
 0x1aa   : > { %v712_v9 = vpop.f32.mrf.mxu0 }
 0x1ab   : > { %v748_v22 = vmax.f32 %v669_v43, %v709_v36  ;;  %v713_v31 = vadd.f32 %v712_v9, %v3808_v7  ;;  %v763_v50 = vmax.f32 %v4502_v48, %v747_v19 }
 0x1ac   : > { %v714_v40 = vpop.f32.mrf.mxu0 }
 0x1ad   : > { %v764_v0 = vmax.f32 %v4504_v53, %v748_v22  ;;  %v749_v21 = vmax.f32 %v673_v59, %v713_v31  ;;  %v715_v23 = vadd.f32 %v714_v40, %v3813_v10  ;;  %774 = vxpose.xlu0.b32.cont [6/8] (short) %v763_v50, 128 }
 0x1ae   : > { %v716_v17 = vpop.f32.mrf.mxu0 }
 0x1af   : > { %v2779_v60 = vpack.c.bf16 %v764_v0, %v762_v44  ;;  %v717_v18 = vadd.f32 %v716_v17, %v3808_v7  ;;  %v765_v54 = vmax.f32 %v4505_v52, %v749_v21  ;;  %v750_v26 = vmax.f32 %v675_v15, %v715_v23 }
 0x1b0   : > { %v718_v57 = vpop.f32.mrf.mxu0  ;;  %v4507_v7 = vmax.f32 %v3929_v8, %v3934_v12  ;;  %v3213_v51 = vld [vmem:[#allocation3 + $0x8] sm:$0xff]   ;;  %v2899_v8 = vpop.f32.mrf.mxu1 }
 0x1b1   : > { %2787 = vst [vmem:[#allocation3 + $0x10] sm:$0xff] %v2779_v60   ;;  %v751_v25 = vmax.f32 %v677_v55, %v717_v18  ;;  %v719_v24 = vadd.f32 %v718_v57, %v3813_v10  ;;  %775 = vxpose.xlu0.b32.cont [7/8] (short) %v765_v54, 128  ;;  %v4057_v33 = vadd.f32 %v2899_v8, %v4054_v20 }
 0x1b2   : > { %v766_v3 = vmax.f32 %v4507_v7, %v750_v26  ;;  %v1160_v12 = vpop.f32.mrf.mxu1 }
 0x1b3   : > { %v752_v27 = vmax.f32 %v679_v1, %v719_v24  ;;  %v767_v29 = vmax.f32 %v4506_v16, %v751_v25  ;;  %v1161_v30 = vadd.f32 %v4054_v20, %v1160_v12 }
 0x1b4   : > { %v2900_v2 = vpop.f32.mrf.mxu1 }
 0x1b5   : > { %v768_v46 = vmax.f32 %v4509_v42, %v752_v27  ;;  %776 = vxpose.xlu0.b32.end [8/8] (short) %v767_v29, 128  ;;  %v4061_v32 = vadd.f32 %v2900_v2, %v4054_v20 }
 0x1b6   : > { %v1163_v5 = vpop.f32.mrf.mxu1 }
 0x1b7   : > { %v2784_v28 = vpack.c.bf16 %v768_v46, %v766_v3  ;;  %v1164_v56 = vadd.f32 %v4054_v20, %v1163_v5  ;;  %v1288_v58 = vpack.c.bf16 %v4061_v32, %v4057_v33 }
 0x1b8   : > { %v3211_v10 = vld [vmem:[#allocation3 + $0x10] sm:$0xff]   ;;  %v4074_v31 = vpop.f32.mrf.mxu1 }
 0x1b9   : > { %2788 = vst [vmem:[#allocation3 + $0x18] sm:$0xff] %v2784_v28   ;;  %v1287_v4 = vpack.c.bf16 %v1164_v56, %v1161_v30 }
 0x1ba   : > { %v1176_v40 = vpop.f32.mrf.mxu1 }
 0x1bb   : > { %2945 = vmatprep.mubr.bf16.mxu1 %v1287_v4  ;;  %v1177_v5 = vadd.f32 %v4054_v20, %v1176_v40 }
 0x1bc   : > { %v2904_v53 = vpop.f32.mrf.mxu1 }
 0x1be   : > { %v1179_v23 = vpop.f32.mrf.mxu1 }
 0x1bf   : > { %v1180_v30 = vadd.f32 %v4054_v20, %v1179_v23 }
 0x1c0   : > { %v3210_v47 = vld [vmem:[#allocation3 + $0x18] sm:$0xff]   ;;  %v2907_v55 = vpop.f32.mrf.mxu1 }
 0x1c1   : > { %2977 = vmatprep.subr.bf16.mxu0 %v3210_v47  ;;  %v1289_v4 = vpack.c.bf16 %v1180_v30, %v1177_v5 }
 0x1c2   : > { %2978 = vmatpush3.bf16.msra.mxu0 %v3210_v47  ;;  %v1192_v52 = vpop.f32.mrf.mxu1 }
 0x1c3   : > { %2979 = vmatprep.subr.bf16.mxu0 %v3211_v10 }
 0x1c4   : > { %v2908_v1 = vpop.f32.mrf.mxu1 }
 0x1c6   : > { %2980 = vmatpush3.bf16.msra.mxu0 %v3211_v10  ;;  %v1195_v24 = vpop.f32.mrf.mxu1 }
 0x1c7   : > { %2981 = vmatprep.subr.bf16.mxu0 %v3213_v51 }
 0x1c8   : > { %v2911_v27 = vpop.f32.mrf.mxu1 }
 0x1ca   : > { %2982 = vmatpush3.bf16.msra.mxu0 %v3213_v51  ;;  %v1208_v29 = vpop.f32.mrf.mxu1 }
 0x1cb   : > { %2983 = vmatprep.subr.bf16.mxu0 %v3215_v63 }
 0x1cc   : > { %v2912_v3 = vpop.f32.mrf.mxu1 }
 0x1ce   : > { %2984 = vmatpush3.bf16.msra.mxu0 %v3215_v63  ;;  %v1211_v42 = vpop.f32.mrf.mxu1 }
 0x1cf   : > { %v1212_v33 = vadd.f32 %v4054_v20, %v1211_v42 }
 0x1d0   : > { %v2915_v28 = vpop.f32.mrf.mxu1 }
 0x1d2   : > { %v1224_v10 = vpop.f32.mrf.mxu1 }
 0x1d4   : > { %v2916_v63 = vpop.f32.mrf.mxu1 }
 0x1d6   : > { %v1227_v12 = vpop.f32.mrf.mxu1 }
 0x1d8   : > { %v2919_v56 = vpop.f32.mrf.mxu1 }
 0x215   : > { %v785_v11 = vpop.trf.xlu0 }
 0x216   : > { %v2741_v34 = vpack.c.bf16 %v785_v11, %v785_v11  ;;  %v1240_v11 = vpop.f32.mrf.mxu1 }
 0x218   : > { %866 = vst.msk [vmem:[#allocation2] sm:$0xf] %vm865_vm0, %v2741_v34  ;;  %v1185_v34 = vadd.f32 %v4074_v31, %v4054_v20 }
 0x219   : > { %v786_v49 = vpop.trf.xlu0 }
 0x21a   : > { %v2742_v61 = vpack.c.bf16 %v786_v49, %v786_v49  ;;  %v1188_v49 = vadd.f32 %v2904_v53, %v4054_v20  ;;  %v1241_v53 = vadd.f32 %v4054_v20, %v1240_v11 }
 0x21c   : > { %867 = vst.msk [vmem:[#allocation2 + $0x4] sm:$0xf] %vm865_vm0, %v2742_v61  ;;  %v1193_v61 = vadd.f32 %v4054_v20, %v1192_v52 }
 0x21d   : > { %v787_v38 = vpop.trf.xlu0 }
 0x21e   : > { %v2743_v13 = vpack.c.bf16 %v787_v38, %v787_v38  ;;  %v1196_v38 = vadd.f32 %v4054_v20, %v1195_v24 }
 0x220   : > { %868 = vst.msk [vmem:[#allocation2 + $0x8] sm:$0xf] %vm865_vm0, %v2743_v13  ;;  %v2920_v13 = vpop.f32.mrf.mxu1 }
 0x221   : > { %v788_v39 = vpop.trf.xlu0 }
 0x222   : > { %v2744_v41 = vpack.c.bf16 %v788_v39, %v788_v39  ;;  %v1290_v39 = vpack.c.bf16 %v1188_v49, %v1185_v34 }
 0x223   : > { %v3231_v2 = vld [vmem:[#allocation2] sm:$0xff]  }
 0x224   : > { %869 = vst.msk [vmem:[#allocation2 + $0xc] sm:$0xf] %vm865_vm0, %v2744_v41  ;;  %v1291_v41 = vpack.c.bf16 %v1196_v38, %v1193_v61 }
 0x225   : > { %v789_v35 = vpop.trf.xlu0 }
 0x226   : > { %v2745_v37 = vpack.c.bf16 %v789_v35, %v789_v35  ;;  %v1243_v35 = vpop.f32.mrf.mxu1 }
 0x228   : > { %870 = vst.msk [vmem:[#allocation2 + $0x10] sm:$0xf] %vm865_vm0, %v2745_v37  ;;  %v1201_v37 = vadd.f32 %v2907_v55, %v4054_v20  ;;  %v2923_v32 = vpop.f32.mrf.mxu1  ;;  %v1249_v55 = vadd.f32 %v2919_v56, %v4054_v20 }
 0x229   : > { %v790_v14 = vpop.trf.xlu0 }
 0x22a   : > { %v2746_v43 = vpack.c.bf16 %v790_v14, %v790_v14  ;;  %v1204_v14 = vadd.f32 %v2908_v1, %v4054_v20 }
 0x22b   : > { %v3230_v8 = vld [vmem:[#allocation2 + $0x8] sm:$0xff]  }
 0x22c   : > { %871 = vst.msk [vmem:[#allocation2 + $0x14] sm:$0xf] %vm865_vm0, %v2746_v43  ;;  %v1209_v43 = vadd.f32 %v4054_v20, %v1208_v29 }
 0x22d   : > { %v791_v45 = vpop.trf.xlu0 }
 0x22e   : > { %v2747_v19 = vpack.c.bf16 %v791_v45, %v791_v45  ;;  %v1293_v45 = vpack.c.bf16 %v1212_v33, %v1209_v43 }
 0x230   : > { %872 = vst.msk [vmem:[#allocation2 + $0x18] sm:$0xf] %vm865_vm0, %v2747_v19  ;;  %v1256_v19 = vpop.f32.mrf.mxu1 }
 0x231   : > { %v792_v36 = vpop.trf.xlu0 }
 0x232   : > { %v2748_v9 = vpack.c.bf16 %v792_v36, %v792_v36  ;;  %v1217_v36 = vadd.f32 %v2911_v27, %v4054_v20  ;;  %v2924_v31 = vpop.f32.mrf.mxu1 }
 0x233   : > { %v3229_v51 = vld [vmem:[#allocation2 + $0x10] sm:$0xff]   ;;  %v1268_v24 = vadd.f32 %v2924_v31, %v4054_v20 }
 0x234   : > { %873 = vst.msk [vmem:[#allocation2 + $0x1c] sm:$0xf] %vm865_vm0, %v2748_v9  ;;  %v1220_v9 = vadd.f32 %v2912_v3, %v4054_v20  ;;  %v1259_v40 = vpop.f32.mrf.mxu1 }
 0x235   : > { %v793_v59 = vpop.trf.xlu0  ;;  %v1260_v52 = vadd.f32 %v4054_v20, %v1259_v40 }
 0x236   : > { %v2749_v22 = vpack.c.bf16 %v793_v59, %v793_v59  ;;  %v1225_v59 = vadd.f32 %v4054_v20, %v1224_v10 }
 0x238   : > { %874 = vst.msk [vmem:[#allocation2 + $0x20] sm:$0xf] %vm865_vm0, %v2749_v22  ;;  %v1228_v22 = vadd.f32 %v4054_v20, %v1227_v12 }
 0x239   : > { %v794_v48 = vpop.trf.xlu0 }
 0x23a   : > { %v2750_v50 = vpack.c.bf16 %v794_v48, %v794_v48  ;;  %v1294_v48 = vpack.c.bf16 %v1220_v9, %v1217_v36 }
 0x23b   : > { %v3228_v47 = vld [vmem:[#allocation2 + $0x18] sm:$0xff]  }
 0x23c   : > { %875 = vst.msk [vmem:[#allocation2 + $0x24] sm:$0xf] %vm865_vm0, %v2750_v50  ;;  %v1295_v50 = vpack.c.bf16 %v1228_v22, %v1225_v59 }
 0x23d   : > { %v795_v62 = vpop.trf.xlu0 }
 0x23e   : > { %v2751_v44 = vpack.c.bf16 %v795_v62, %v795_v62  ;;  %v1233_v62 = vadd.f32 %v2915_v28, %v4054_v20 }
 0x240   : > { %876 = vst.msk [vmem:[#allocation2 + $0x28] sm:$0xf] %vm865_vm0, %v2751_v44  ;;  %v1236_v44 = vadd.f32 %v2916_v63, %v4054_v20 }
 0x241   : > { %v796_v0 = vpop.trf.xlu0 }
 0x242   : > { %v2752_v21 = vpack.c.bf16 %v796_v0, %v796_v0  ;;  %v1244_v0 = vadd.f32 %v4054_v20, %v1243_v35  ;;  %v1296_v23 = vpack.c.bf16 %v1236_v44, %v1233_v62 }
 0x243   : > { %v3227_v46 = vld [vmem:[#allocation2 + $0x20] sm:$0xff]  }
 0x244   : > { %877 = vst.msk [vmem:[#allocation2 + $0x2c] sm:$0xf] %vm865_vm0, %v2752_v21  ;;  %v2927_v21 = vpop.f32.mrf.mxu1 }
 0x245   : > { %v797_v15 = vpop.trf.xlu0  ;;  %v1281_v3 = vadd.f32 %v2927_v21, %v4054_v20 }
 0x246   : > { %v2753_v17 = vpack.c.bf16 %v797_v15, %v797_v15  ;;  %v1297_v15 = vpack.c.bf16 %v1244_v0, %v1241_v53 }
 0x248   : > { %878 = vst.msk [vmem:[#allocation2 + $0x30] sm:$0xf] %vm865_vm0, %v2753_v17  ;;  %v1272_v17 = vpop.f32.mrf.mxu1 }
 0x249   : > { %v798_v60 = vpop.trf.xlu0  ;;  %v1273_v27 = vadd.f32 %v4054_v20, %v1272_v17 }
 0x24a   : > { %v2754_v18 = vpack.c.bf16 %v798_v60, %v798_v60  ;;  %v1252_v60 = vadd.f32 %v2920_v13, %v4054_v20 }
 0x24b   : > { %v3226_v6 = vld [vmem:[#allocation2 + $0x28] sm:$0xff]  }
 0x24c   : > { %879 = vst.msk [vmem:[#allocation2 + $0x34] sm:$0xf] %vm865_vm0, %v2754_v18  ;;  %v1257_v18 = vadd.f32 %v4054_v20, %v1256_v19 }
 0x24d   : > { %v799_v54 = vpop.trf.xlu0 }
 0x24e   : > { %v2755_v57 = vpack.c.bf16 %v799_v54, %v799_v54  ;;  %v2928_v54 = vpop.f32.mrf.mxu1  ;;  %v1299_v1 = vpack.c.bf16 %v1260_v52, %v1257_v18 }
 0x250   : > { %880 = vst.msk [vmem:[#allocation2 + $0x38] sm:$0xf] %vm865_vm0, %v2755_v57  ;;  %v1298_v57 = vpack.c.bf16 %v1252_v60, %v1249_v55 }
 0x251   : > { %v800_v26 = vpop.trf.xlu0 }
 0x252   : > { %v2756_v25 = vpack.c.bf16 %v800_v26, %v800_v26  ;;  %v1275_v26 = vpop.f32.mrf.mxu1 }
 0x253   : > { %v3225_v7 = vld [vmem:[#allocation2 + $0x30] sm:$0xff]  }
 0x254   : > { %881 = vst.msk [vmem:[#allocation2 + $0x3c] sm:$0xf] %vm865_vm0, %v2756_v25  ;;  %v1265_v25 = vadd.f32 %v2923_v32, %v4054_v20 }
 0x256   : > { %v1300_v29 = vpack.c.bf16 %v1268_v24, %v1265_v25 }
 0x25b   : > { %v3224_v16 = vld [vmem:[#allocation2 + $0x38] sm:$0xff]  }
 0x25c   : > { %2929 = vmatprep.subr.bf16.mxu1 %v3224_v16 }
 0x25d   : > { %2930 = vmatpush3.bf16.msra.mxu1 %v3224_v16  ;;  %v1276_v16 = vadd.f32 %v4054_v20, %v1275_v26 }
 0x25e   : > { %2931 = vmatprep.subr.bf16.mxu1 %v3225_v7 }
 0x261   : > { %2932 = vmatpush3.bf16.msra.mxu1 %v3225_v7  ;;  %v1301_v7 = vpack.c.bf16 %v1276_v16, %v1273_v27 }
 0x262   : > { %2933 = vmatprep.subr.bf16.mxu1 %v3226_v6 }
 0x265   : > { %2934 = vmatpush3.bf16.msra.mxu1 %v3226_v6  ;;  %v1284_v6 = vadd.f32 %v2928_v54, %v4054_v20 }
 0x266   : > { %2935 = vmatprep.subr.bf16.mxu1 %v3227_v46 }
 0x267   : > { %v1302_v42 = vpack.c.bf16 %v1284_v6, %v1281_v3 }
 0x269   : > { %2936 = vmatpush3.bf16.msra.mxu1 %v3227_v46 }
 0x26a   : > { %2937 = vmatprep.subr.bf16.mxu1 %v3228_v47 }
 0x26d   : > { %2938 = vmatpush3.bf16.msra.mxu1 %v3228_v47 }
 0x26e   : > { %2939 = vmatprep.subr.bf16.mxu1 %v3229_v51 }
 0x271   : > { %2940 = vmatpush3.bf16.msra.mxu1 %v3229_v51 }
 0x272   : > { %2941 = vmatprep.subr.bf16.mxu1 %v3230_v8 }
 0x275   : > { %2942 = vmatpush3.bf16.msra.mxu1 %v3230_v8 }
 0x276   : > { %2943 = vmatprep.subr.bf16.mxu1 %v3231_v2 }
 0x279   : > { %2944 = vmatpush3.bf16.msra.mxu1 %v3231_v2 }
 0x27c   : > { %2946 = vmatmul.mubr.bf16.vlgmr.msra.gmra.mxu1 %v1288_v58  ;;  %v1292_v58 = vpack.c.bf16 %v1204_v14, %v1201_v37 }
 0x27d   : > { %2949 = vmatprep.mubr.bf16.mxu1 %v1289_v4 }
 0x284   : > { %2950 = vmatmul.mubr.bf16.gmra.mxu1 %v1290_v39 }
 0x285   : > { %2953 = vmatprep.mubr.bf16.mxu1 %v1291_v41 }
 0x28c   : > { %2954 = vmatmul.mubr.bf16.gmra.mxu1 %v1292_v58 }
 0x28d   : > { %2957 = vmatprep.mubr.bf16.mxu1 %v1293_v45 }
 0x294   : > { %2958 = vmatmul.mubr.bf16.gmra.mxu1 %v1294_v48 }
 0x295   : > { %2961 = vmatprep.mubr.bf16.mxu1 %v1295_v50 }
 0x29c   : > { %2962 = vmatmul.mubr.bf16.gmra.mxu1 %v1296_v23 }
 0x29d   : > { %2965 = vmatprep.mubr.bf16.mxu1 %v1297_v15 }
 0x2a4   : > { %2966 = vmatmul.mubr.bf16.gmra.mxu1 %v1298_v57 }
 0x2a5   : > { %2969 = vmatprep.mubr.bf16.mxu1 %v1299_v1 }
 0x2ac   : > { %2970 = vmatmul.mubr.bf16.gmra.mxu1 %v1300_v29 }
 0x2ad   : > { %2973 = vmatprep.mubr.bf16.mxu1 %v1301_v7 }
 0x2b4   : > { %2974 = vmatmul.mubr.bf16.gmra.mxu1 %v1302_v42 }
 0x33c   : > { %v4116_v46 = vpop.f32.mrf.mxu1 }
 0x33d   : > { %v1535_v28 = vsel %vm1528_vm1, %v4116_v46, -inf }
 0x33e   : > { %1536 = vmax.xlane.f32.xlu1 %v1535_v28  ;;  %v4120_v47 = vpop.f32.mrf.mxu1 }
 0x33f   : > { %v1529_v51 = vsel %vm1528_vm1, %v4120_v47, -inf }
 0x340   : > { %v4122_v10 = vpop.f32.mrf.mxu1 }
 0x341   : > { %v1538_v8 = vsel %vm1528_vm1, %v4122_v10, -inf }
 0x342   : > { %1530 = vmax.xlane.f32.xlu1 %v1529_v51  ;;  %v4126_v20 = vpop.f32.mrf.mxu1 }
 0x343   : > { %v1532_v5 = vsel %vm1528_vm1, %v4126_v20, -inf }
 0x344   : > { %v4128_v63 = vpop.f32.mrf.mxu1 }
 0x345   : > { %v1547_v4 = vsel %vm1528_vm1, %v4128_v63, -inf }
 0x346   : > { %1539 = vmax.xlane.f32.xlu1 %v1538_v8  ;;  %v4132_v12 = vpop.f32.mrf.mxu1 }
 0x347   : > { %v1541_v61 = vsel %vm1528_vm1, %v4132_v12, -inf }
 0x348   : > { %v4134_v2 = vpop.f32.mrf.mxu1 }
 0x349   : > { %v1550_v39 = vsel %vm1528_vm1, %v4134_v2, -inf }
 0x34a   : > { %1533 = vmax.xlane.f32.xlu1 %v1532_v5  ;;  %v4138_v30 = vpop.f32.mrf.mxu1 }
 0x34b   : > { %v1544_v37 = vsel %vm1528_vm1, %v4138_v30, -inf }
 0x34c   : > { %v4140_v56 = vpop.f32.mrf.mxu1 }
 0x34d   : > { %v1559_v33 = vsel %vm1528_vm1, %v4140_v56, -inf }
 0x34e   : > { %1548 = vmax.xlane.f32.xlu1 %v1547_v4  ;;  %v4144_v11 = vpop.f32.mrf.mxu1 }
 0x34f   : > { %v1553_v34 = vsel %vm1528_vm1, %v4144_v11, -inf }
 0x350   : > { %1554 = vmax.xlane.f32.xlu0 %v1553_v34  ;;  %v4148_v49 = vpop.f32.mrf.mxu1 }
 0x351   : > { %v1562_v45 = vsel %vm1528_vm1, %v4148_v49, -inf }
 0x352   : > { %1542 = vmax.xlane.f32.xlu1 %v1541_v61  ;;  %v4152_v38 = vpop.f32.mrf.mxu1 }
 0x353   : > { %v1556_v9 = vsel %vm1528_vm1, %v4152_v38, -inf }
 0x354   : > { %v4154_v13 = vpop.f32.mrf.mxu1 }
 0x355   : > { %v1571_v31 = vsel %vm1528_vm1, %v4154_v13, -inf }
 0x356   : > { %1551 = vmax.xlane.f32.xlu1 %v1550_v39  ;;  %v4158_v41 = vpop.f32.mrf.mxu1 }
 0x357   : > { %v1565_v40 = vsel %vm1528_vm1, %v4158_v41, -inf }
 0x358   : > { %v4160_v35 = vpop.f32.mrf.mxu1 }
 0x359   : > { %v1574_v53 = vsel %vm1528_vm1, %v4160_v35, -inf }
 0x35a   : > { %1545 = vmax.xlane.f32.xlu1 %v1544_v37  ;;  %v4164_v14 = vpop.f32.mrf.mxu1 }
 0x35b   : > { %v1568_v23 = vsel %vm1528_vm1, %v4164_v14, -inf }
 0x35c   : > { %v4166_v43 = vpop.f32.mrf.mxu1 }
 0x35d   : > { %v1583_v55 = vsel %vm1528_vm1, %v4166_v43, -inf }
 0x35e   : > { %1560 = vmax.xlane.f32.xlu1 %v1559_v33  ;;  %v4170_v32 = vpop.f32.mrf.mxu1 }
 0x35f   : > { %v1577_v52 = vsel %vm1528_vm1, %v4170_v32, -inf }
 0x360   : > { %v4172_v58 = vpop.f32.mrf.mxu1 }
 0x361   : > { %v1586_v57 = vsel %vm1528_vm1, %v4172_v58, -inf }
 0x362   : > { %1563 = vmax.xlane.f32.xlu1 %v1562_v45  ;;  %v4176_v19 = vpop.f32.mrf.mxu1 }
 0x363   : > { %v1580_v1 = vsel %vm1528_vm1, %v4176_v19, -inf }
 0x364   : > { %v4178_v36 = vpop.f32.mrf.mxu1 }
 0x365   : > { %v1595_v26 = vsel %vm1528_vm1, %v4178_v36, -inf }
 0x366   : > { %1557 = vmax.xlane.f32.xlu1 %v1556_v9  ;;  %v4182_v59 = vpop.f32.mrf.mxu1 }
 0x367   : > { %v1589_v25 = vsel %vm1528_vm1, %v4182_v59, -inf }
 0x368   : > { %v4184_v22 = vpop.f32.mrf.mxu1 }
 0x369   : > { %v1598_v24 = vsel %vm1528_vm1, %v4184_v22, -inf }
 0x36a   : > { %1572 = vmax.xlane.f32.xlu1 %v1571_v31  ;;  %v4188_v48 = vpop.f32.mrf.mxu1 }
 0x36b   : > { %v1592_v27 = vsel %vm1528_vm1, %v4188_v48, -inf }
 0x36c   : > { %v4190_v50 = vpop.f32.mrf.mxu1 }
 0x36d   : > { %v1607_v16 = vsel %vm1528_vm1, %v4190_v50, -inf }
 0x36e   : > { %1566 = vmax.xlane.f32.xlu1 %v1565_v40  ;;  %v4194_v62 = vpop.f32.mrf.mxu1 }
 0x36f   : > { %v1601_v29 = vsel %vm1528_vm1, %v4194_v62, -inf }
 0x370   : > { %v4196_v44 = vpop.f32.mrf.mxu1 }
 0x371   : > { %v1610_v3 = vsel %vm1528_vm1, %v4196_v44, -inf }
 0x372   : > { %1575 = vmax.xlane.f32.xlu1 %v1574_v53  ;;  %v4200_v0 = vpop.f32.mrf.mxu1 }
 0x373   : > { %v1604_v7 = vsel %vm1528_vm1, %v4200_v0, -inf }
 0x374   : > { %v4202_v21 = vpop.f32.mrf.mxu1 }
 0x375   : > { %v1619_v42 = vsel %vm1528_vm1, %v4202_v21, -inf }
 0x376   : > { %1569 = vmax.xlane.f32.xlu1 %v1568_v23  ;;  %v4206_v15 = vpop.f32.mrf.mxu1 }
 0x377   : > { %v1613_v6 = vsel %vm1528_vm1, %v4206_v15, -inf }
 0x378   : > { %v4208_v17 = vpop.f32.mrf.mxu1 }
 0x379   : > { %v1622_v54 = vsel %vm1528_vm1, %v4208_v17, -inf }
 0x37a   : > { %1584 = vmax.xlane.f32.xlu1 %v1583_v55  ;;  %v4212_v60 = vpop.f32.mrf.mxu1 }
 0x37b   : > { %v1616_v18 = vsel %vm1528_vm1, %v4212_v60, -inf }
 0x37c   : > { %1617 = vmax.xlane.f32.xlu0 %v1616_v18 }
 0x37e   : > { %1578 = vmax.xlane.f32.xlu1 %v1577_v52 }
 0x380   : > { %1623 = vmax.xlane.f32.xlu0 %v1622_v54 }
 0x382   : > { %1587 = vmax.xlane.f32.xlu1 %v1586_v57 }
 0x386   : > { %1581 = vmax.xlane.f32.xlu1 %v1580_v1 }
 0x38a   : > { %1596 = vmax.xlane.f32.xlu1 %v1595_v26 }
 0x38e   : > { %1590 = vmax.xlane.f32.xlu1 %v1589_v25 }
 0x392   : > { %1599 = vmax.xlane.f32.xlu1 %v1598_v24 }
 0x396   : > { %1593 = vmax.xlane.f32.xlu1 %v1592_v27 }
 0x39a   : > { %1608 = vmax.xlane.f32.xlu1 %v1607_v16 }
 0x39e   : > { %1602 = vmax.xlane.f32.xlu1 %v1601_v29 }
 0x3a2   : > { %1605 = vmax.xlane.f32.xlu1 %v1604_v7 }
 0x3a6   : > { %1611 = vmax.xlane.f32.xlu1 %v1610_v3 }
 0x3aa   : > { %1614 = vmax.xlane.f32.xlu1 %v1613_v6 }
 0x3ae   : > { %1620 = vmax.xlane.f32.xlu1 %v1619_v42 }
 0x3c7   : > { %v1537_v28 = vpop.xlane.xlu1 %1536 }
 0x3c8   : > { %v1627_v51 = vsub.f32 %v4116_v46, %v1537_v28 }
 0x3ca   : > { %v1661_v4 = vmul.f32 1.442695, %v1627_v51 }
 0x3cb   : > { %v1531_v8 = vpop.xlane.xlu1 %1530 }
 0x3cc   : > { %v1625_v5 = vsub.f32 %v4120_v47, %v1531_v8 }
 0x3ce   : > { %v1657_v34 = vmul.f32 1.442695, %v1625_v5 }
 0x3cf   : > { %v1540_v61 = vpop.xlane.xlu1 %1539 }
 0x3d0   : > { %3256 = vpow2.f32 %v1657_v34  ;;  %v1628_v39 = vsub.f32 %v4122_v10, %v1540_v61 }
 0x3d1   : > { %3258 = vpow2.f32 %v1661_v4 }
 0x3d2   : > { %v1663_v37 = vmul.f32 1.442695, %v1628_v39 }
 0x3d3   : > { %v1534_v33 = vpop.xlane.xlu1 %1533 }
 0x3d4   : > { %v1626_v45 = vsub.f32 %v4126_v20, %v1534_v33  ;;  %3260 = vpow2.f32 %v1663_v37 }
 0x3d6   : > { %v1659_v9 = vmul.f32 1.442695, %v1626_v45 }
 0x3d7   : > { %v1549_v31 = vpop.xlane.xlu1 %1548 }
 0x3d8   : > { %3262 = vpow2.f32 %v1659_v9  ;;  %v1631_v46 = vsub.f32 %v4128_v63, %v1549_v31 }
 0x3d9   : > { %v1555_v40 = vpop.xlane.xlu0 %1554 }
 0x3da   : > { %v1669_v55 = vmul.f32 1.442695, %v1631_v46  ;;  %v1633_v18 = vsub.f32 %v4144_v11, %v1555_v40 }
 0x3db   : > { %v1543_v53 = vpop.xlane.xlu1 %1542 }
 0x3dc   : > { %v1629_v47 = vsub.f32 %v4132_v12, %v1543_v53  ;;  %v1673_v1 = vmul.f32 1.442695, %v1633_v18 }
 0x3dd   : > { %v3257_v23 = vpop.eup %3256 }
 0x3de   : > { %v1665_v10 = vmul.f32 1.442695, %v1629_v47  ;;  %v1721_v52 = vsel %vm1528_vm1, %v3257_v23, 0.0  ;;  %v3259_v54 = vpop.eup %3258 }
 0x3df   : > { %v1552_v57 = vpop.xlane.xlu1 %1551  ;;  %1722 = vadd.xlane.f32.xlu1 %v1721_v52  ;;  %v1727_v63 = vsel %vm1528_vm1, %v3259_v54, 0.0 }
 0x3e0   : > { %3264 = vpow2.f32 %v1665_v10  ;;  %v1632_v20 = vsub.f32 %v4134_v2, %v1552_v57 }
 0x3e1   : > { %3266 = vpow2.f32 %v1669_v55  ;;  %v3261_v12 = vpop.eup %3260 }
 0x3e2   : > { %v1671_v26 = vmul.f32 1.442695, %v1632_v20  ;;  %3268 = vpow2.f32 %v1673_v1  ;;  %v1850_v7 = vpack.c.bf16 %v3261_v12, %v3259_v54 }
 0x3e3   : > { %v1546_v25 = vpop.xlane.xlu1 %1545  ;;  %1728 = vadd.xlane.f32.xlu1 %v1727_v63 }
 0x3e4   : > { %v1630_v24 = vsub.f32 %v4138_v30, %v1546_v25  ;;  %3270 = vpow2.f32 %v1671_v26  ;;  %v1730_v30 = vsel %vm1528_vm1, %v3261_v12, 0.0 }
 0x3e5   : > { %v3263_v11 = vpop.eup %3262 }
 0x3e6   : > { %v1667_v27 = vmul.f32 1.442695, %v1630_v24  ;;  %v1724_v16 = vsel %vm1528_vm1, %v3263_v11, 0.0  ;;  %v1849_v29 = vpack.c.bf16 %v3263_v11, %v3257_v23 }
 0x3e7   : > { %v1561_v3 = vpop.xlane.xlu1 %1560  ;;  %1725 = vadd.xlane.f32.xlu0 %v1724_v16 }
 0x3e8   : > { %3272 = vpow2.f32 %v1667_v27  ;;  %v1635_v2 = vsub.f32 %v4140_v56, %v1561_v3  ;;  %2985 = vmatprep.mubr.msk.bf16.mxu0 %vm1528_vm1, %v1849_v29 }
 0x3e9   : > { %2986 = vmatmul.mubr.msk.bf16.vlgmr.msra.gmra.mxu0 %vm1528_vm1, %v1850_v7 }
 0x3ea   : > { %v1677_v6 = vmul.f32 1.442695, %v1635_v2 }
 0x3eb   : > { %v1564_v42 = vpop.xlane.xlu1 %1563  ;;  %1731 = vadd.xlane.f32.xlu0 %v1730_v30 }
 0x3ec   : > { %3274 = vpow2.f32 %v1677_v6  ;;  %v1636_v28 = vsub.f32 %v4148_v49, %v1564_v42 }
 0x3ed   : > { %v3265_v51 = vpop.eup %3264 }
 0x3ee   : > { %v1733_v8 = vsel %vm1528_vm1, %v3265_v51, 0.0  ;;  %v3267_v5 = vpop.eup %3266  ;;  %v1679_v4 = vmul.f32 1.442695, %v1636_v28 }
 0x3ef   : > { %v1558_v34 = vpop.xlane.xlu1 %1557  ;;  %1734 = vadd.xlane.f32.xlu1 %v1733_v8  ;;  %v1739_v39 = vsel %vm1528_vm1, %v3267_v5, 0.0  ;;  %v3269_v37 = vpop.eup %3268 }
 0x3f0   : > { %v1634_v56 = vsub.f32 %v4152_v38, %v1558_v34  ;;  %3276 = vpow2.f32 %v1679_v4  ;;  %v1745_v31 = vsel %vm1528_vm1, %v3269_v37, 0.0 }
 0x3f1   : > { %v3271_v45 = vpop.eup %3270 }
 0x3f2   : > { %v1675_v61 = vmul.f32 1.442695, %v1634_v56  ;;  %v1852_v38 = vpack.c.bf16 %v3271_v45, %v3267_v5  ;;  %v1742_v10 = vsel %vm1528_vm1, %v3271_v45, 0.0 }
 0x3f3   : > { %v1573_v33 = vpop.xlane.xlu1 %1572  ;;  %1740 = vadd.xlane.f32.xlu1 %v1739_v39 }
 0x3f4   : > { %3278 = vpow2.f32 %v1675_v61  ;;  %v1639_v49 = vsub.f32 %v4154_v13, %v1573_v33 }
 0x3f5   : > { %v3273_v9 = vpop.eup %3272 }
 0x3f6   : > { %v1736_v46 = vsel %vm1528_vm1, %v3273_v9, 0.0  ;;  %v1851_v40 = vpack.c.bf16 %v3273_v9, %v3265_v51  ;;  %v1685_v55 = vmul.f32 1.442695, %v1639_v49  ;;  %v3233_v9 = vld [vmem:[#allocation9 + $0x30] sm:$0xff]  }
 0x3f7   : > { %v1567_v53 = vpop.xlane.xlu1 %1566  ;;  %1746 = vadd.xlane.f32.xlu1 %v1745_v31  ;;  %1737 = vadd.xlane.f32.xlu0 %v1736_v46 }
 0x3f8   : > { %v1637_v47 = vsub.f32 %v4158_v41, %v1567_v53  ;;  %2989 = vmatprep.mubr.msk.bf16.mxu0 %vm1528_vm1, %v1851_v40 }
 0x3f9   : > { %v3275_v23 = vpop.eup %3274  ;;  %2990 = vmatmul.mubr.msk.bf16.gmra.mxu0 %vm1528_vm1, %v1852_v38 }
 0x3fa   : > { %v1681_v18 = vmul.f32 1.442695, %v1637_v47  ;;  %v1751_v13 = vsel %vm1528_vm1, %v3275_v23, 0.0  ;;  %v3234_v47 = vld [vmem:[#allocation9 + $0x28] sm:$0xff]  }
 0x3fb   : > { %v1576_v52 = vpop.xlane.xlu1 %1575  ;;  %1752 = vadd.xlane.f32.xlu1 %v1751_v13  ;;  %1743 = vadd.xlane.f32.xlu0 %v1742_v10  ;;  %v3235_v10 = vld [vmem:[#allocation9 + $0x20] sm:$0xff]  }
 0x3fc   : > { %3280 = vpow2.f32 %v1681_v18  ;;  %v1640_v54 = vsub.f32 %v4160_v35, %v1576_v52 }
 0x3fd   : > { %3282 = vpow2.f32 %v1685_v55  ;;  %v3277_v20 = vpop.eup %3276 }
 0x3fe   : > { %v1687_v57 = vmul.f32 1.442695, %v1640_v54  ;;  %v1854_v11 = vpack.c.bf16 %v3277_v20, %v3275_v23  ;;  %v1754_v27 = vsel %vm1528_vm1, %v3277_v20, 0.0 }
 0x3ff   : > { %v1570_v41 = vpop.xlane.xlu1 %1569 }
 0x400   : > { %v1638_v1 = vsub.f32 %v4164_v14, %v1570_v41  ;;  %3284 = vpow2.f32 %v1687_v57 }
 0x401   : > { %v3279_v63 = vpop.eup %3278 }
 0x402   : > { %v1683_v26 = vmul.f32 1.442695, %v1638_v1  ;;  %v1748_v25 = vsel %vm1528_vm1, %v3279_v63, 0.0  ;;  %v1853_v12 = vpack.c.bf16 %v3279_v63, %v3269_v37  ;;  %v3236_v1 = vld [vmem:[#allocation9 + $0x18] sm:$0xff]  }
 0x403   : > { %v1585_v24 = vpop.xlane.xlu1 %1584  ;;  %1749 = vadd.xlane.f32.xlu0 %v1748_v25 }
 0x404   : > { %3286 = vpow2.f32 %v1683_v26  ;;  %2993 = vmatprep.mubr.msk.bf16.mxu0 %vm1528_vm1, %v1853_v12  ;;  %v1643_v35 = vsub.f32 %v4166_v43, %v1585_v24  ;;  %v3237_v12 = vld [vmem:[#allocation9 + $0x10] sm:$0xff]  }
 0x405   : > { %2994 = vmatmul.mubr.msk.bf16.gmra.mxu0 %vm1528_vm1, %v1854_v11  ;;  %v1618_v11 = vpop.xlane.xlu0 %1617 }
 0x406   : > { %v1693_v7 = vmul.f32 1.442695, %v1643_v35 }
 0x407   : > { %v1579_v16 = vpop.xlane.xlu1 %1578  ;;  %1755 = vadd.xlane.f32.xlu0 %v1754_v27 }
 0x408   : > { %v1641_v14 = vsub.f32 %v4170_v32, %v1579_v16 }
 0x409   : > { %v3281_v29 = vpop.eup %3280 }
 0x40a   : > { %v1689_v3 = vmul.f32 1.442695, %v1641_v14  ;;  %v1757_v2 = vsel %vm1528_vm1, %v3281_v29, 0.0  ;;  %v3283_v6 = vpop.eup %3282 }
 0x40b   : > { %v1588_v30 = vpop.xlane.xlu1 %1587  ;;  %1758 = vadd.xlane.f32.xlu1 %v1757_v2  ;;  %v1763_v43 = vsel %vm1528_vm1, %v3283_v6, 0.0 }
 0x40c   : > { %3288 = vpow2.f32 %v1689_v3  ;;  %v1644_v42 = vsub.f32 %v4172_v58, %v1588_v30  ;;  %v3232_v58 = vld [vmem:[#allocation9 + $0x38] sm:$0xff]   ;;  %v1654_v3 = vsub.f32 %v4212_v60, %v1618_v11 }
 0x40d   : > { %3290 = vpow2.f32 %v1693_v7  ;;  %v3285_v8 = vpop.eup %3284  ;;  %3017 = vmatprep.subr.bf16.mxu1 %v3232_v58  ;;  %v3238_v7 = vld [vmem:[#allocation9 + $0x8] sm:$0xff]  }
 0x40e   : > { %v1695_v28 = vmul.f32 1.442695, %v1644_v42  ;;  %v1856_v39 = vpack.c.bf16 %v3285_v8, %v3283_v6  ;;  %v1766_v33 = vsel %vm1528_vm1, %v3285_v8, 0.0  ;;  %3018 = vmatpush3.bf16.msra.mxu1 %v3232_v58  ;;  %v1624_v6 = vpop.xlane.xlu0 %1623  ;;  %v1715_v8 = vmul.f32 1.442695, %v1654_v3 }
 0x40f   : > { %v1582_v51 = vpop.xlane.xlu1 %1581  ;;  %1764 = vadd.xlane.f32.xlu1 %v1763_v43  ;;  %3019 = vmatprep.subr.bf16.mxu1 %v3233_v9 }
 0x410   : > { %v1642_v32 = vsub.f32 %v4176_v19, %v1582_v51  ;;  %3292 = vpow2.f32 %v1695_v28  ;;  %v3239_v28 = vld [vmem:[#allocation9] sm:$0xff]  }
 0x411   : > { %v3287_v5 = vpop.eup %3286 }
 0x412   : > { %v1691_v4 = vmul.f32 1.442695, %v1642_v32  ;;  %v1760_v34 = vsel %vm1528_vm1, %v3287_v5, 0.0  ;;  %v1855_v56 = vpack.c.bf16 %v3287_v5, %v3281_v29  ;;  %3020 = vmatpush3.bf16.msra.mxu1 %v3233_v9 }
 0x413   : > { %v1597_v61 = vpop.xlane.xlu1 %1596  ;;  %1761 = vadd.xlane.f32.xlu0 %v1760_v34  ;;  %3021 = vmatprep.subr.bf16.mxu1 %v3234_v47 }
 0x414   : > { %3294 = vpow2.f32 %v1691_v4  ;;  %2997 = vmatprep.mubr.msk.bf16.mxu0 %vm1528_vm1, %v1855_v56  ;;  %v1647_v37 = vsub.f32 %v4178_v36, %v1597_v61 }
 0x415   : > { %2998 = vmatmul.mubr.msk.bf16.gmra.mxu0 %vm1528_vm1, %v1856_v39 }
 0x416   : > { %v1701_v31 = vmul.f32 1.442695, %v1647_v37  ;;  %3022 = vmatpush3.bf16.msra.mxu1 %v3234_v47 }
 0x417   : > { %v1591_v19 = vpop.xlane.xlu1 %1590  ;;  %1767 = vadd.xlane.f32.xlu0 %v1766_v33  ;;  %3023 = vmatprep.subr.bf16.mxu1 %v3235_v10 }
 0x418   : > { %v1645_v45 = vsub.f32 %v4182_v59, %v1591_v19 }
 0x419   : > { %v3289_v49 = vpop.eup %3288 }
 0x41a   : > { %v1697_v46 = vmul.f32 1.442695, %v1645_v45  ;;  %v1769_v40 = vsel %vm1528_vm1, %v3289_v49, 0.0  ;;  %v3291_v53 = vpop.eup %3290  ;;  %3024 = vmatpush3.bf16.msra.mxu1 %v3235_v10 }
 0x41b   : > { %v1600_v38 = vpop.xlane.xlu1 %1599  ;;  %1770 = vadd.xlane.f32.xlu1 %v1769_v40  ;;  %v1775_v23 = vsel %vm1528_vm1, %v3291_v53, 0.0  ;;  %3025 = vmatprep.subr.bf16.mxu1 %v3236_v1 }
 0x41c   : > { %3296 = vpow2.f32 %v1697_v46  ;;  %v1648_v36 = vsub.f32 %v4184_v22, %v1600_v38 }
 0x41d   : > { %3298 = vpow2.f32 %v1701_v31  ;;  %v3293_v18 = vpop.eup %3292 }
 0x41e   : > { %v1703_v59 = vmul.f32 1.442695, %v1648_v36  ;;  %v1858_v20 = vpack.c.bf16 %v3293_v18, %v3291_v53  ;;  %v1778_v63 = vsel %vm1528_vm1, %v3293_v18, 0.0  ;;  %3026 = vmatpush3.bf16.msra.mxu1 %v3236_v1 }
 0x41f   : > { %v1594_v55 = vpop.xlane.xlu1 %1593  ;;  %1776 = vadd.xlane.f32.xlu1 %v1775_v23  ;;  %3027 = vmatprep.subr.bf16.mxu1 %v3237_v12 }
 0x420   : > { %v1646_v13 = vsub.f32 %v4188_v48, %v1594_v55  ;;  %3300 = vpow2.f32 %v1703_v59 }
 0x421   : > { %v3295_v52 = vpop.eup %3294 }
 0x422   : > { %v1699_v54 = vmul.f32 1.442695, %v1646_v13  ;;  %v1772_v57 = vsel %vm1528_vm1, %v3295_v52, 0.0  ;;  %v1857_v41 = vpack.c.bf16 %v3295_v52, %v3289_v49  ;;  %3028 = vmatpush3.bf16.msra.mxu1 %v3237_v12 }
 0x423   : > { %v1609_v22 = vpop.xlane.xlu1 %1608  ;;  %1773 = vadd.xlane.f32.xlu0 %v1772_v57  ;;  %3029 = vmatprep.subr.bf16.mxu1 %v3238_v7 }
 0x424   : > { %3302 = vpow2.f32 %v1699_v54  ;;  %3001 = vmatprep.mubr.msk.bf16.mxu0 %vm1528_vm1, %v1857_v41  ;;  %v1651_v48 = vsub.f32 %v4190_v50, %v1609_v22 }
 0x425   : > { %3002 = vmatmul.mubr.msk.bf16.gmra.mxu0 %vm1528_vm1, %v1858_v20 }
 0x426   : > { %v1709_v35 = vmul.f32 1.442695, %v1651_v48  ;;  %3030 = vmatpush3.bf16.msra.mxu1 %v3238_v7 }
 0x427   : > { %v1603_v26 = vpop.xlane.xlu1 %1602  ;;  %1779 = vadd.xlane.f32.xlu0 %v1778_v63  ;;  %3031 = vmatprep.subr.bf16.mxu1 %v3239_v28 }
 0x428   : > { %v1649_v25 = vsub.f32 %v4194_v62, %v1603_v26 }
 0x429   : > { %v3297_v24 = vpop.eup %3296 }
 0x42a   : > { %v1705_v27 = vmul.f32 1.442695, %v1649_v25  ;;  %v1781_v16 = vsel %vm1528_vm1, %v3297_v24, 0.0  ;;  %v3299_v14 = vpop.eup %3298  ;;  %3032 = vmatpush3.bf16.msra.mxu1 %v3239_v28 }
 0x42b   : > { %v1606_v29 = vpop.xlane.xlu1 %1605  ;;  %1782 = vadd.xlane.f32.xlu1 %v1781_v16  ;;  %v1787_v2 = vsel %vm1528_vm1, %v3299_v14, 0.0 }
 0x42c   : > { %3304 = vpow2.f32 %v1705_v27  ;;  %v1650_v50 = vsub.f32 %v4200_v0, %v1606_v29  ;;  %v1656_v0 = vsub.f32 %v4208_v17, %v1624_v6 }
 0x42d   : > { %3306 = vpow2.f32 %v1709_v35  ;;  %v3301_v42 = vpop.eup %3300 }
 0x42e   : > { %v1707_v62 = vmul.f32 1.442695, %v1650_v50  ;;  %v1860_v34 = vpack.c.bf16 %v3301_v42, %v3299_v14  ;;  %v1790_v17 = vsel %vm1528_vm1, %v3301_v42, 0.0 }
 0x42f   : > { %v1612_v30 = vpop.xlane.xlu1 %1611  ;;  %1788 = vadd.xlane.f32.xlu1 %v1787_v2 }
 0x430   : > { %3308 = vpow2.f32 %v1707_v62  ;;  %v1652_v43 = vsub.f32 %v4196_v44, %v1612_v30  ;;  %v1719_v44 = vmul.f32 1.442695, %v1656_v0 }
 0x431   : > { %v3303_v51 = vpop.eup %3302 }
 0x432   : > { %v1711_v32 = vmul.f32 1.442695, %v1652_v43  ;;  %v1784_v60 = vsel %vm1528_vm1, %v3303_v51, 0.0  ;;  %v1859_v5 = vpack.c.bf16 %v3303_v51, %v3297_v24 }
 0x433   : > { %v1615_v4 = vpop.xlane.xlu1 %1614  ;;  %1785 = vadd.xlane.f32.xlu0 %v1784_v60 }
 0x434   : > { %3310 = vpow2.f32 %v1711_v32  ;;  %v1653_v56 = vsub.f32 %v4206_v15, %v1615_v4  ;;  %3005 = vmatprep.mubr.msk.bf16.mxu0 %vm1528_vm1, %v1859_v5 }
 0x435   : > { %3006 = vmatmul.mubr.msk.bf16.gmra.mxu0 %vm1528_vm1, %v1860_v34  ;;  %3312 = vpow2.f32 %v1715_v8 }
 0x436   : > { %v1713_v61 = vmul.f32 1.442695, %v1653_v56 }
 0x437   : > { %v1621_v39 = vpop.xlane.xlu1 %1620  ;;  %1791 = vadd.xlane.f32.xlu0 %v1790_v17 }
 0x438   : > { %3314 = vpow2.f32 %v1713_v61  ;;  %v1655_v58 = vsub.f32 %v4202_v21, %v1621_v39 }
 0x439   : > { %v3305_v37 = vpop.eup %3304  ;;  %3316 = vpow2.f32 %v1719_v44 }
 0x43a   : > { %v1717_v33 = vmul.f32 1.442695, %v1655_v58  ;;  %v1793_v19 = vsel %vm1528_vm1, %v3305_v37, 0.0  ;;  %v3307_v15 = vpop.eup %3306 }
 0x43b   : > { %1794 = vadd.xlane.f32.xlu1 %v1793_v19  ;;  %v1799_v9 = vsel %vm1528_vm1, %v3307_v15, 0.0 }
 0x43c   : > { %3318 = vpow2.f32 %v1717_v33 }
 0x43d   : > { %v3309_v45 = vpop.eup %3308 }
 0x43e   : > { %v1796_v49 = vsel %vm1528_vm1, %v3309_v45, 0.0  ;;  %v1861_v31 = vpack.c.bf16 %v3309_v45, %v3305_v37 }
 0x43f   : > { %1800 = vadd.xlane.f32.xlu1 %v1799_v9  ;;  %1797 = vadd.xlane.f32.xlu0 %v1796_v49 }
 0x440   : > { %3009 = vmatprep.mubr.msk.bf16.mxu0 %vm1528_vm1, %v1861_v31 }
 0x441   : > { %v3311_v46 = vpop.eup %3310 }
 0x442   : > { %v1802_v21 = vsel %vm1528_vm1, %v3311_v46, 0.0  ;;  %v1862_v40 = vpack.c.bf16 %v3311_v46, %v3307_v15  ;;  %v3313_v53 = vpop.eup %3312 }
 0x443   : > { %1803 = vadd.xlane.f32.xlu0 %v1802_v21  ;;  %v1808_v47 = vsel %vm1528_vm1, %v3313_v53, 0.0 }
 0x444   : > { %3010 = vmatmul.mubr.msk.bf16.gmra.mxu0 %vm1528_vm1, %v1862_v40 }
 0x445   : > { %v3315_v38 = vpop.eup %3314 }
 0x446   : > { %v1805_v36 = vsel %vm1528_vm1, %v3315_v38, 0.0  ;;  %v1863_v23 = vpack.c.bf16 %v3313_v53, %v3315_v38  ;;  %v3317_v59 = vpop.eup %3316 }
 0x447   : > { %1806 = vadd.xlane.f32.xlu1 %v1805_v36  ;;  %1809 = vadd.xlane.f32.xlu0 %v1808_v47  ;;  %v1814_v13 = vsel %vm1528_vm1, %v3317_v59, 0.0 }
 0x448   : > { %3013 = vmatprep.mubr.msk.bf16.mxu0 %vm1528_vm1, %v1863_v23 }
 0x449   : > { %v3319_v55 = vpop.eup %3318 }
 0x44a   : > { %v1811_v18 = vsel %vm1528_vm1, %v3319_v55, 0.0  ;;  %v1864_v10 = vpack.c.bf16 %v3317_v59, %v3319_v55 }
 0x44b   : > { %1812 = vadd.xlane.f32.xlu1 %v1811_v18  ;;  %1815 = vadd.xlane.f32.xlu0 %v1814_v13 }
 0x44c   : > { %3014 = vmatmul.mubr.msk.bf16.gmra.mxu0 %vm1528_vm1, %v1864_v10 }
 0x468   : > { %v1723_v54 = vpop.xlane.xlu1 %1722 }
 0x469   : > { %3320 = vrcp.f32 %v1723_v54 }
 0x46c   : > { %v1729_v41 = vpop.xlane.xlu1 %1728 }
 0x470   : > { %v1726_v52 = vpop.xlane.xlu0 %1725 }
 0x474   : > { %v1732_v57 = vpop.xlane.xlu0 %1731 }
 0x475   : > { %3322 = vrcp.f32 %v1732_v57 }
 0x476   : > { %3324 = vrcp.f32 %v1726_v52  ;;  %v3321_v63 = vpop.eup %3320 }
 0x477   : > { %3326 = vrcp.f32 %v1729_v41 }
 0x478   : > { %v1735_v1 = vpop.xlane.xlu1 %1734 }
 0x479   : > { %3328 = vrcp.f32 %v1735_v1 }
 0x47c   : > { %v1741_v16 = vpop.xlane.xlu1 %1740 }
 0x480   : > { %v1738_v22 = vpop.xlane.xlu0 %1737  ;;  %v1747_v2 = vpop.xlane.xlu1 %1746 }
 0x482   : > { %v3323_v25 = vpop.eup %3322 }
 0x483   : > { %v3325_v24 = vpop.eup %3324 }
 0x484   : > { %v1744_v12 = vpop.xlane.xlu0 %1743  ;;  %v3327_v27 = vpop.eup %3326 }
 0x485   : > { %3330 = vrcp.f32 %v1744_v12  ;;  %v1753_v43 = vpop.xlane.xlu1 %1752 }
 0x486   : > { %3332 = vrcp.f32 %v1738_v22  ;;  %v3329_v28 = vpop.eup %3328 }
 0x487   : > { %3334 = vrcp.f32 %v1741_v16 }
 0x488   : > { %3336 = vrcp.f32 %v1747_v2 }
 0x48c   : > { %v1750_v62 = vpop.xlane.xlu0 %1749 }
 0x490   : > { %v1756_v30 = vpop.xlane.xlu0 %1755 }
 0x491   : > { %3338 = vrcp.f32 %v1756_v30 }
 0x492   : > { %v3331_v8 = vpop.eup %3330  ;;  %3340 = vrcp.f32 %v1750_v62 }
 0x493   : > { %v3333_v0 = vpop.eup %3332  ;;  %3342 = vrcp.f32 %v1753_v43 }
 0x494   : > { %v3335_v5 = vpop.eup %3334  ;;  %v1759_v58 = vpop.xlane.xlu1 %1758 }
 0x495   : > { %v3337_v33 = vpop.eup %3336  ;;  %3344 = vrcp.f32 %v1759_v58 }
 0x498   : > { %v1765_v21 = vpop.xlane.xlu1 %1764 }
 0x49c   : > { %v1762_v17 = vpop.xlane.xlu0 %1761 }
 0x49e   : > { %v3339_v15 = vpop.eup %3338 }
 0x49f   : > { %v3341_v9 = vpop.eup %3340 }
 0x4a0   : > { %v1768_v45 = vpop.xlane.xlu0 %1767  ;;  %v3343_v46 = vpop.eup %3342 }
 0x4a1   : > { %3346 = vrcp.f32 %v1768_v45 }
 0x4a2   : > { %3348 = vrcp.f32 %v1762_v17  ;;  %v3345_v13 = vpop.eup %3344 }
 0x4a3   : > { %3350 = vrcp.f32 %v1765_v21 }
 0x4a4   : > { %v1771_v55 = vpop.xlane.xlu1 %1770 }
 0x4a5   : > { %3352 = vrcp.f32 %v1771_v55 }
 0x4a8   : > { %v1777_v1 = vpop.xlane.xlu1 %1776 }
 0x4a9   : > { %v2987_v20 = vpop.f32.mrf.mxu0 }
 0x4aa   : > { %v2108_v50 = vmul.f32 %v3327_v27, %v2987_v20 }
 0x4ab   : > { %v1979_v48 = vpop.f32.mrf.mxu0 }
 0x4ac   : > { %v2106_v14 = vmul.f32 %v3321_v63, %v1979_v48  ;;  %v1774_v23 = vpop.xlane.xlu0 %1773 }
 0x4ad   : > { %v2988_v26 = vpop.f32.mrf.mxu0 }
 0x4ae   : > { %v2109_v11 = vmul.f32 %v3323_v25, %v2988_v26  ;;  %v3347_v52 = vpop.eup %3346 }
 0x4af   : > { %v1982_v35 = vpop.f32.mrf.mxu0  ;;  %v3349_v57 = vpop.eup %3348 }
 0x4b0   : > { %v2107_v29 = vmul.f32 %v3325_v24, %v1982_v35  ;;  %v2139_v3 = vpack.c.bf16 %v2109_v11, %v2108_v50  ;;  %v1780_v54 = vpop.xlane.xlu0 %1779  ;;  %v3351_v20 = vpop.eup %3350 }
 0x4b1   : > { %3354 = vrcp.f32 %v1780_v54 }
 0x4b2   : > { %v2138_v7 = vpack.c.bf16 %v2107_v29, %v2106_v14  ;;  %3356 = vrcp.f32 %v1774_v23  ;;  %v3353_v16 = vpop.eup %3352 }
 0x4b3   : > { %3358 = vrcp.f32 %v1777_v1 }
 0x4b4   : > { %3033 = vmatprep.mubr.bf16.mxu1 %v2138_v7  ;;  %v1783_v35 = vpop.xlane.xlu1 %1782 }
 0x4b5   : > { %3034 = vmatmul.mubr.bf16.vlgmr.msra.gmra.mxu1 %v2139_v3  ;;  %3360 = vrcp.f32 %v1783_v35 }
 0x4b9   : > { %v2991_v6 = vpop.f32.mrf.mxu0 }
 0x4ba   : > { %v2112_v56 = vmul.f32 %v3335_v5, %v2991_v6  ;;  %v1789_v6 = vpop.xlane.xlu1 %1788 }
 0x4bb   : > { %v1995_v42 = vpop.f32.mrf.mxu0 }
 0x4bc   : > { %v2110_v4 = vmul.f32 %v3329_v28, %v1995_v42  ;;  %v1786_v24 = vpop.xlane.xlu0 %1785 }
 0x4bd   : > { %v2992_v51 = vpop.f32.mrf.mxu0 }
 0x4be   : > { %v2113_v32 = vmul.f32 %v3331_v8, %v2992_v51  ;;  %v3355_v29 = vpop.eup %3354 }
 0x4bf   : > { %v1998_v60 = vpop.f32.mrf.mxu0  ;;  %v3357_v7 = vpop.eup %3356 }
 0x4c0   : > { %v2111_v34 = vmul.f32 %v3333_v0, %v1998_v60  ;;  %v2141_v61 = vpack.c.bf16 %v2113_v32, %v2112_v56  ;;  %v1792_v50 = vpop.xlane.xlu0 %1791  ;;  %v3359_v2 = vpop.eup %3358 }
 0x4c1   : > { %3362 = vrcp.f32 %v1792_v50 }
 0x4c2   : > { %v2140_v44 = vpack.c.bf16 %v2111_v34, %v2110_v4  ;;  %3364 = vrcp.f32 %v1786_v24  ;;  %v3361_v4 = vpop.eup %3360 }
 0x4c3   : > { %3366 = vrcp.f32 %v1789_v6 }
 0x4c4   : > { %3037 = vmatprep.mubr.bf16.mxu1 %v2140_v44  ;;  %v1795_v0 = vpop.xlane.xlu1 %1794 }
 0x4c5   : > { %v2995_v39 = vpop.f32.mrf.mxu0  ;;  %3038 = vmatmul.mubr.bf16.gmra.mxu1 %v2141_v61  ;;  %3368 = vrcp.f32 %v1795_v0 }
 0x4c6   : > { %v2116_v38 = vmul.f32 %v3343_v46, %v2995_v39 }
 0x4c7   : > { %v2011_v37 = vpop.f32.mrf.mxu0 }
 0x4c8   : > { %v2114_v40 = vmul.f32 %v3337_v33, %v2011_v37  ;;  %v1798_v51 = vpop.xlane.xlu0 %1797  ;;  %v1801_v34 = vpop.xlane.xlu1 %1800 }
 0x4c9   : > { %v2996_v19 = vpop.f32.mrf.mxu0 }
 0x4ca   : > { %v2117_v49 = vmul.f32 %v3339_v15, %v2996_v19 }
 0x4cb   : > { %v2014_v31 = vpop.f32.mrf.mxu0 }
 0x4cc   : > { %v2115_v53 = vmul.f32 %v3341_v9, %v2014_v31  ;;  %v2143_v47 = vpack.c.bf16 %v2117_v49, %v2116_v38  ;;  %v1804_v32 = vpop.xlane.xlu0 %1803 }
 0x4cd   : > { %3370 = vrcp.f32 %v1804_v32 }
 0x4ce   : > { %v2142_v36 = vpack.c.bf16 %v2115_v53, %v2114_v40  ;;  %v3363_v44 = vpop.eup %3362  ;;  %3372 = vrcp.f32 %v1798_v51 }
 0x4cf   : > { %v3365_v61 = vpop.eup %3364  ;;  %3374 = vrcp.f32 %v1801_v34 }
 0x4d0   : > { %3041 = vmatprep.mubr.bf16.mxu1 %v2142_v36  ;;  %v1810_v17 = vpop.xlane.xlu0 %1809  ;;  %v3367_v37 = vpop.eup %3366 }
 0x4d1   : > { %3042 = vmatmul.mubr.bf16.gmra.mxu1 %v2143_v47  ;;  %v1807_v15 = vpop.xlane.xlu1 %1806 }
 0x4d2   : > { %3376 = vrcp.f32 %v1807_v15  ;;  %v3369_v53 = vpop.eup %3368 }
 0x4d4   : > { %v1816_v31 = vpop.xlane.xlu0 %1815 }
 0x4d5   : > { %v2999_v59 = vpop.f32.mrf.mxu0  ;;  %v1813_v46 = vpop.xlane.xlu1 %1812  ;;  %3378 = vrcp.f32 %v1816_v31 }
 0x4d6   : > { %v2120_v26 = vmul.f32 %v3351_v20, %v2999_v59  ;;  %3380 = vrcp.f32 %v1810_v17 }
 0x4d7   : > { %v2027_v18 = vpop.f32.mrf.mxu0  ;;  %3382 = vrcp.f32 %v1813_v46 }
 0x4d8   : > { %v2118_v48 = vmul.f32 %v3345_v13, %v2027_v18 }
 0x4d9   : > { %v3000_v10 = vpop.f32.mrf.mxu0 }
 0x4da   : > { %v2121_v41 = vmul.f32 %v3347_v52, %v3000_v10  ;;  %v3371_v36 = vpop.eup %3370 }
 0x4db   : > { %v2030_v22 = vpop.f32.mrf.mxu0  ;;  %v3373_v47 = vpop.eup %3372 }
 0x4dc   : > { %v2119_v63 = vmul.f32 %v3349_v57, %v2030_v22  ;;  %v2145_v12 = vpack.c.bf16 %v2121_v41, %v2120_v26  ;;  %v3375_v55 = vpop.eup %3374 }
 0x4de   : > { %v2144_v25 = vpack.c.bf16 %v2119_v63, %v2118_v48 }
 0x4df   : > { %v3377_v22 = vpop.eup %3376 }
 0x4e0   : > { %3045 = vmatprep.mubr.bf16.mxu1 %v2144_v25 }
 0x4e1   : > { %3046 = vmatmul.mubr.bf16.gmra.mxu1 %v2145_v12 }
 0x4e2   : > { %v3379_v1 = vpop.eup %3378 }
 0x4e3   : > { %v3381_v48 = vpop.eup %3380 }
 0x4e4   : > { %v3383_v25 = vpop.eup %3382 }
 0x4e5   : > { %v3003_v11 = vpop.f32.mrf.mxu0 }
 0x4e6   : > { %v2124_v43 = vmul.f32 %v3359_v2, %v3003_v11 }
 0x4e7   : > { %v2043_v27 = vpop.f32.mrf.mxu0 }
 0x4e8   : > { %v2122_v30 = vmul.f32 %v3353_v16, %v2043_v27  ;;  %v4327_v16 = vld [vmem:[%s4471_s4] ss:$0 sm:$0xff] }
 0x4e9   : > { %v3004_v14 = vpop.f32.mrf.mxu0 }
 0x4ea   : > { %v2125_v3 = vmul.f32 %v3355_v29, %v3004_v14  ;;  %v3384_v14 = vld [vmem:[%s3739_s6 + $0x8] sm:$0xff]  }
 0x4eb   : > { %v2046_v62 = vpop.f32.mrf.mxu0  ;;  %v2388_v29 = vunpack.c.l.bf16 %v3384_v14 }
 0x4ec   : > { %v2123_v42 = vmul.f32 %v3357_v7, %v2046_v62  ;;  %v2147_v8 = vpack.c.bf16 %v2125_v3, %v2124_v43  ;;  %v3385_v7 = vld [vmem:[%s3739_s6] sm:$0xff]  }
 0x4ed   : > { %v2386_v3 = vunpack.c.l.bf16 %v3385_v7 }
 0x4ee   : > { %v2146_v28 = vpack.c.bf16 %v2123_v42, %v2122_v30  ;;  %v2389_v42 = vunpack.c.h.bf16 %v3384_v14 }
 0x4f0   : > { %3049 = vmatprep.mubr.bf16.mxu1 %v2146_v28  ;;  %v2387_v28 = vunpack.c.h.bf16 %v3385_v7 }
 0x4f1   : > { %3050 = vmatmul.mubr.bf16.gmra.mxu1 %v2147_v8 }
 0x4f5   : > { %v3007_v60 = vpop.f32.mrf.mxu0 }
 0x4f6   : > { %v2128_v45 = vmul.f32 %v3367_v37, %v3007_v60 }
 0x4f7   : > { %v2059_v5 = vpop.f32.mrf.mxu0 }
 0x4f8   : > { %v2126_v33 = vmul.f32 %v3361_v4, %v2059_v5  ;;  %v3386_v4 = vld [vmem:[%s3739_s6 + $0x18] sm:$0xff]  }
 0x4f9   : > { %v3008_v56 = vpop.f32.mrf.mxu0  ;;  %v2392_v34 = vunpack.c.l.bf16 %v3386_v4 }
 0x4fa   : > { %v2129_v39 = vmul.f32 %v3363_v44, %v3008_v56 }
 0x4fb   : > { %v2062_v58 = vpop.f32.mrf.mxu0 }
 0x4fc   : > { %v2127_v19 = vmul.f32 %v3365_v61, %v2062_v58  ;;  %v2149_v49 = vpack.c.bf16 %v2129_v39, %v2128_v45  ;;  %v3387_v61 = vld [vmem:[%s3739_s6 + $0x10] sm:$0xff]  }
 0x4fd   : > { %v2390_v17 = vunpack.c.l.bf16 %v3387_v61 }
 0x4fe   : > { %v2148_v9 = vpack.c.bf16 %v2127_v19, %v2126_v33  ;;  %v2393_v33 = vunpack.c.h.bf16 %v3386_v4 }
 0x500   : > { %3053 = vmatprep.mubr.bf16.mxu1 %v2148_v9  ;;  %v2391_v9 = vunpack.c.h.bf16 %v3387_v61 }
 0x501   : > { %3054 = vmatmul.mubr.bf16.gmra.mxu1 %v2149_v49 }
 0x504   : > { %v3011_v21 = vpop.f32.mrf.mxu0 }
 0x505   : > { %v2132_v10 = vmul.f32 %v3375_v55, %v3011_v21 }
 0x506   : > { %v2075_v40 = vpop.f32.mrf.mxu0 }
 0x507   : > { %v2130_v18 = vmul.f32 %v3369_v53, %v2075_v40  ;;  %v3388_v40 = vld [vmem:[%s3739_s6 + $0x28] sm:$0xff]  }
 0x508   : > { %v3012_v38 = vpop.f32.mrf.mxu0  ;;  %v2396_v53 = vunpack.c.l.bf16 %v3388_v40 }
 0x509   : > { %v2133_v23 = vmul.f32 %v3371_v36, %v3012_v38 }
 0x50a   : > { %v2078_v59 = vpop.f32.mrf.mxu0 }
 0x50b   : > { %v2131_v13 = vmul.f32 %v3373_v47, %v2078_v59  ;;  %v2151_v57 = vpack.c.bf16 %v2133_v23, %v2132_v10  ;;  %v3389_v47 = vld [vmem:[%s3739_s6 + $0x20] sm:$0xff]  }
 0x50c   : > { %v3015_v52 = vpop.f32.mrf.mxu0  ;;  %v2394_v23 = vunpack.c.l.bf16 %v3389_v47 }
 0x50d   : > { %v2150_v54 = vpack.c.bf16 %v2131_v13, %v2130_v18  ;;  %v2136_v11 = vmul.f32 %v3383_v25, %v3015_v52  ;;  %v2397_v13 = vunpack.c.h.bf16 %v3388_v40 }
 0x50e   : > { %v2091_v41 = vpop.f32.mrf.mxu0 }
 0x50f   : > { %3057 = vmatprep.mubr.bf16.mxu1 %v2150_v54  ;;  %v2134_v12 = vmul.f32 %v3377_v22, %v2091_v41 }
 0x510   : > { %v3016_v20 = vpop.f32.mrf.mxu0  ;;  %3058 = vmatmul.mubr.bf16.gmra.mxu1 %v2151_v57  ;;  %v2395_v57 = vunpack.c.h.bf16 %v3389_v47 }
 0x511   : > { %v2137_v63 = vmul.f32 %v3379_v1, %v3016_v20 }
 0x512   : > { %v2094_v26 = vpop.f32.mrf.mxu0 }
 0x513   : > { %v2135_v24 = vmul.f32 %v3381_v48, %v2094_v26  ;;  %v2153_v27 = vpack.c.bf16 %v2137_v63, %v2136_v11  ;;  %v3390_v48 = vld [vmem:[%s3739_s6 + $0x38] sm:$0xff]  }
 0x514   : > { %v2400_v63 = vunpack.c.l.bf16 %v3390_v48  ;;  %v2401_v14 = vunpack.c.h.bf16 %v3390_v48 }
 0x515   : > { %v2152_v35 = vpack.c.bf16 %v2135_v24, %v2134_v12  ;;  %v3391_v12 = vld [vmem:[%s3739_s6 + $0x30] sm:$0xff]  }
 0x516   : > { %v2398_v24 = vunpack.c.l.bf16 %v3391_v12 }
 0x517   : > { %3061 = vmatprep.mubr.bf16.mxu1 %v2152_v35 }
 0x518   : > { %3062 = vmatmul.mubr.bf16.gmra.mxu1 %v2153_v27 }
 0x575   : > { %v3035_v50 = vpop.f32.mrf.mxu1 }
 0x576   : > { %v2268_v62 = vadd.f32 %v3035_v50, %v4327_v16 }
 0x577   : > { %v2259_v2 = vpop.f32.mrf.mxu1 }
 0x578   : > { %v2420_v6 = vadd.f32 %v2388_v29, %v2268_v62  ;;  %v2260_v30 = vadd.f32 %v4327_v16, %v2259_v2 }
 0x579   : > { %v3036_v43 = vpop.f32.mrf.mxu1 }
 0x57a   : > { %2452 = vst [vmem:[%s4334_s11 + $0x10] sm:$0xff] %v2420_v6  ;;  %v2418_v51 = vadd.f32 %v2386_v3, %v2260_v30  ;;  %v2271_v8 = vadd.f32 %v3036_v43, %v4327_v16  ;;  %v2399_v3 = vunpack.c.h.bf16 %v3391_v12 }
 0x57b   : > { %v2262_v0 = vpop.f32.mrf.mxu1 }
 0x57c   : > { %2450 = vst [vmem:[%s4334_s11] sm:$0xff] %v2418_v51  ;;  %v2421_v32 = vadd.f32 %v2389_v42, %v2271_v8  ;;  %v2263_v60 = vadd.f32 %v4327_v16, %v2262_v0  ;;  %v3392_v42 = vld [vmem:[%s3739_s6 + $0x48] sm:$0xff]   ;;  %v3393_v8 = vld [vmem:[%s3739_s6 + $0x40] sm:$0xff]  }
 0x57d   : > { %v2404_v43 = vunpack.c.l.bf16 %v3392_v42  ;;  %v2402_v0 = vunpack.c.l.bf16 %v3393_v8  ;;  %v2405_v4 = vunpack.c.h.bf16 %v3392_v42  ;;  %v2403_v61 = vunpack.c.h.bf16 %v3393_v8 }
 0x57e   : > { %2453 = vst [vmem:[%s4334_s11 + $0x18] sm:$0xff] %v2421_v32  ;;  %v2419_v5 = vadd.f32 %v2387_v28, %v2263_v60 }
 0x580   : > { %2451 = vst [vmem:[%s4334_s11 + $0x8] sm:$0xff] %v2419_v5 }
 0x585   : > { %v3039_v56 = vpop.f32.mrf.mxu1 }
 0x586   : > { %v2284_v44 = vadd.f32 %v3039_v56, %v4327_v16 }
 0x587   : > { %v2275_v39 = vpop.f32.mrf.mxu1 }
 0x588   : > { %v2424_v58 = vadd.f32 %v2392_v34, %v2284_v44  ;;  %v2276_v37 = vadd.f32 %v4327_v16, %v2275_v39 }
 0x589   : > { %v3040_v19 = vpop.f32.mrf.mxu1 }
 0x58a   : > { %2456 = vst [vmem:[%s4334_s11 + $0x30] sm:$0xff] %v2424_v58  ;;  %v2422_v15 = vadd.f32 %v2390_v17, %v2276_v37  ;;  %v2287_v45 = vadd.f32 %v3040_v19, %v4327_v16 }
 0x58b   : > { %v2278_v49 = vpop.f32.mrf.mxu1 }
 0x58c   : > { %2454 = vst [vmem:[%s4334_s11 + $0x20] sm:$0xff] %v2422_v15  ;;  %v2425_v31 = vadd.f32 %v2393_v33, %v2287_v45  ;;  %v2279_v46 = vadd.f32 %v4327_v16, %v2278_v49  ;;  %v3394_v33 = vld [vmem:[%s3739_s6 + $0x58] sm:$0xff]  }
 0x58d   : > { %v2408_v19 = vunpack.c.l.bf16 %v3394_v33  ;;  %v2409_v40 = vunpack.c.h.bf16 %v3394_v33 }
 0x58e   : > { %2457 = vst [vmem:[%s4334_s11 + $0x38] sm:$0xff] %v2425_v31  ;;  %v2423_v21 = vadd.f32 %v2391_v9, %v2279_v46  ;;  %v3395_v9 = vld [vmem:[%s3739_s6 + $0x50] sm:$0xff]  }
 0x58f   : > { %v2406_v49 = vunpack.c.l.bf16 %v3395_v9  ;;  %v2407_v47 = vunpack.c.h.bf16 %v3395_v9 }
 0x590   : > { %2455 = vst [vmem:[%s4334_s11 + $0x28] sm:$0xff] %v2423_v21 }
 0x591   : > { %v3043_v38 = vpop.f32.mrf.mxu1 }
 0x592   : > { %v2300_v36 = vadd.f32 %v3043_v38, %v4327_v16 }
 0x593   : > { %v2291_v59 = vpop.f32.mrf.mxu1 }
 0x594   : > { %v2428_v55 = vadd.f32 %v2396_v53, %v2300_v36  ;;  %v2292_v18 = vadd.f32 %v4327_v16, %v2291_v59 }
 0x595   : > { %v3044_v10 = vpop.f32.mrf.mxu1 }
 0x596   : > { %2460 = vst [vmem:[%s4334_s11 + $0x50] sm:$0xff] %v2428_v55  ;;  %v2426_v52 = vadd.f32 %v2394_v23, %v2292_v18  ;;  %v2303_v54 = vadd.f32 %v3044_v10, %v4327_v16 }
 0x597   : > { %v2294_v41 = vpop.f32.mrf.mxu1 }
 0x598   : > { %2458 = vst [vmem:[%s4334_s11 + $0x40] sm:$0xff] %v2426_v52  ;;  %v2429_v22 = vadd.f32 %v2397_v13, %v2303_v54  ;;  %v2295_v20 = vadd.f32 %v4327_v16, %v2294_v41  ;;  %v3396_v13 = vld [vmem:[%s3739_s6 + $0x68] sm:$0xff]  }
 0x599   : > { %v2412_v10 = vunpack.c.l.bf16 %v3396_v13  ;;  %v2413_v48 = vunpack.c.h.bf16 %v3396_v13 }
 0x59a   : > { %2461 = vst [vmem:[%s4334_s11 + $0x58] sm:$0xff] %v2429_v22  ;;  %v2427_v1 = vadd.f32 %v2395_v57, %v2295_v20  ;;  %v3397_v57 = vld [vmem:[%s3739_s6 + $0x60] sm:$0xff]  }
 0x59b   : > { %v2410_v41 = vunpack.c.l.bf16 %v3397_v57  ;;  %v2411_v12 = vunpack.c.h.bf16 %v3397_v57 }
 0x59c   : > { %2459 = vst [vmem:[%s4334_s11 + $0x48] sm:$0xff] %v2427_v1 }
 0x5a1   : > { %v3047_v26 = vpop.f32.mrf.mxu1 }
 0x5a2   : > { %v2316_v25 = vadd.f32 %v3047_v26, %v4327_v16 }
 0x5a3   : > { %v2307_v11 = vpop.f32.mrf.mxu1 }
 0x5a4   : > { %v2432_v35 = vadd.f32 %v2400_v63, %v2316_v25  ;;  %v2308_v27 = vadd.f32 %v4327_v16, %v2307_v11 }
 0x5a5   : > { %v3048_v29 = vpop.f32.mrf.mxu1 }
 0x5a6   : > { %2464 = vst [vmem:[%s4334_s11 + $0x70] sm:$0xff] %v2432_v35  ;;  %v2430_v50 = vadd.f32 %v2398_v24, %v2308_v27  ;;  %v2319_v7 = vadd.f32 %v3048_v29, %v4327_v16  ;;  %v3398_v27 = vld [vmem:[%s3739_s6 + $0x78] sm:$0xff]  }
 0x5a7   : > { %v2310_v62 = vpop.f32.mrf.mxu1  ;;  %v2417_v42 = vunpack.c.h.bf16 %v3398_v27 }
 0x5a8   : > { %2462 = vst [vmem:[%s4334_s11 + $0x60] sm:$0xff] %v2430_v50  ;;  %v2433_v2 = vadd.f32 %v2401_v14, %v2319_v7  ;;  %v2311_v6 = vadd.f32 %v4327_v16, %v2310_v62  ;;  %v2416_v14 = vunpack.c.l.bf16 %v3398_v27 }
 0x5aa   : > { %2465 = vst [vmem:[%s4334_s11 + $0x78] sm:$0xff] %v2433_v2  ;;  %v2431_v30 = vadd.f32 %v2399_v3, %v2311_v6  ;;  %v3399_v3 = vld [vmem:[%s3739_s6 + $0x70] sm:$0xff]   ;;  %s3574_s6 = smov [#allocation10]  }
 0x5ab   : > { %v2414_v62 = vunpack.c.l.bf16 %v3399_v3  ;;  %v2415_v8 = vunpack.c.h.bf16 %v3399_v3  ;;  %s3484_s26 = sshll.u32 %s3574_s6, 4  ;;  %s3485_s26 = int_to_ptr.vmem [resolvable:$false] %s3484_s26 }
 0x5ac   : > { %2463 = vst [vmem:[%s4334_s11 + $0x68] sm:$0xff] %v2431_v30  ;;  %s3486_s28 = scalar_lea.vmem %s3485_s26, 8192  ;;  %p3487_p2 = scmp.lt.s32.totalorder %s4417_s13, %s3485_s26 }
 0x5ad   : > { %p3488_p13 = scmp.lt.s32.totalorder %s3486_s28, %s3480_s16 }
 0x5af   : > { %p3489_p0 = por %p3488_p13, %p3487_p2 }
 0x5b1   : > { %v3051_v28 = vpop.f32.mrf.mxu1  ;;  %p3490_p5 = pnand %p3489_p0, %p3483_p11 }
 0x5b2   : > { %v2332_v51 = vadd.f32 %v3051_v28, %v4327_v16 }
 0x5b3   : > { %v2323_v32 = vpop.f32.mrf.mxu1 }
 0x5b4   : > { %v2436_v60 = vadd.f32 %v2404_v43, %v2332_v51  ;;  %v2324_v5 = vadd.f32 %v4327_v16, %v2323_v32 }
 0x5b5   : > { %v3052_v34 = vpop.f32.mrf.mxu1 }
 0x5b6   : > { %2468 = vst [vmem:[%s4334_s11 + $0x90] sm:$0xff] %v2436_v60  ;;  %v2434_v56 = vadd.f32 %v2402_v0, %v2324_v5  ;;  %v2335_v44 = vadd.f32 %v3052_v34, %v4327_v16 }
 0x5b7   : > { %v2326_v17 = vpop.f32.mrf.mxu1 }
 0x5b8   : > { %2466 = vst [vmem:[%s4334_s11 + $0x80] sm:$0xff] %v2434_v56  ;;  %v2437_v39 = vadd.f32 %v2405_v4, %v2335_v44  ;;  %v2327_v58 = vadd.f32 %v4327_v16, %v2326_v17 }
 0x5ba   : > { %2469 = vst [vmem:[%s4334_s11 + $0x98] sm:$0xff] %v2437_v39  ;;  %v2435_v37 = vadd.f32 %v2403_v61, %v2327_v58 }
 0x5bc   : > { %2467 = vst [vmem:[%s4334_s11 + $0x88] sm:$0xff] %v2435_v37 }
 0x5c1   : > { %v3055_v15 = vpop.f32.mrf.mxu1 }
 0x5c2   : > { %v2348_v45 = vadd.f32 %v3055_v15, %v4327_v16 }
 0x5c3   : > { %v2339_v31 = vpop.f32.mrf.mxu1 }
 0x5c4   : > { %v2440_v46 = vadd.f32 %v2408_v19, %v2348_v45  ;;  %v2340_v21 = vadd.f32 %v4327_v16, %v2339_v31 }
 0x5c5   : > { %v3056_v53 = vpop.f32.mrf.mxu1 }
 0x5c6   : > { %2472 = vst [vmem:[%s4334_s11 + $0xb0] sm:$0xff] %v2440_v46  ;;  %v2438_v38 = vadd.f32 %v2406_v49, %v2340_v21  ;;  %v2351_v36 = vadd.f32 %v3056_v53, %v4327_v16 }
 0x5c7   : > { %v2342_v23 = vpop.f32.mrf.mxu1 }
 0x5c8   : > { %2470 = vst [vmem:[%s4334_s11 + $0xa0] sm:$0xff] %v2438_v38  ;;  %v2441_v59 = vadd.f32 %v2409_v40, %v2351_v36  ;;  %v2343_v55 = vadd.f32 %v4327_v16, %v2342_v23 }
 0x5ca   : > { %2473 = vst [vmem:[%s4334_s11 + $0xb8] sm:$0xff] %v2441_v59  ;;  %v2439_v18 = vadd.f32 %v2407_v47, %v2343_v55 }
 0x5cc   : > { %2471 = vst [vmem:[%s4334_s11 + $0xa8] sm:$0xff] %v2439_v18 }
 0x5d0   : > { %v3059_v52 = vpop.f32.mrf.mxu1 }
 0x5d1   : > { %v2364_v54 = vadd.f32 %v3059_v52, %v4327_v16 }
 0x5d2   : > { %v2355_v22 = vpop.f32.mrf.mxu1 }
 0x5d3   : > { %v2444_v20 = vadd.f32 %v2412_v10, %v2364_v54  ;;  %v2356_v1 = vadd.f32 %v4327_v16, %v2355_v22 }
 0x5d4   : > { %v3060_v63 = vpop.f32.mrf.mxu1 }
 0x5d5   : > { %2476 = vst [vmem:[%s4334_s11 + $0xd0] sm:$0xff] %v2444_v20  ;;  %v2442_v26 = vadd.f32 %v2410_v41, %v2356_v1  ;;  %v2367_v25 = vadd.f32 %v3060_v63, %v4327_v16 }
 0x5d6   : > { %v2358_v24 = vpop.f32.mrf.mxu1 }
 0x5d7   : > { %2474 = vst [vmem:[%s4334_s11 + $0xc0] sm:$0xff] %v2442_v26  ;;  %v2445_v11 = vadd.f32 %v2413_v48, %v2367_v25  ;;  %v2359_v35 = vadd.f32 %v4327_v16, %v2358_v24 }
 0x5d8   : > { %v3063_v29 = vpop.f32.mrf.mxu1 }
 0x5d9   : > { %2477 = vst [vmem:[%s4334_s11 + $0xd8] sm:$0xff] %v2445_v11  ;;  %v2443_v50 = vadd.f32 %v2411_v12, %v2359_v35  ;;  %v2380_v7 = vadd.f32 %v3063_v29, %v4327_v16 }
 0x5da   : > { %v2371_v2 = vpop.f32.mrf.mxu1 }
 0x5db   : > { %2475 = vst [vmem:[%s4334_s11 + $0xc8] sm:$0xff] %v2443_v50  ;;  %v2448_v6 = vadd.f32 %v2416_v14, %v2380_v7  ;;  %v2372_v30 = vadd.f32 %v4327_v16, %v2371_v2 }
 0x5dc   : > { %v3064_v43 = vpop.f32.mrf.mxu1 }
 0x5dd   : > { %2480 = vst [vmem:[%s4334_s11 + $0xf0] sm:$0xff] %v2448_v6  ;;  %v2446_v28 = vadd.f32 %v2414_v62, %v2372_v30  ;;  %v2383_v51 = vadd.f32 %v3064_v43, %v4327_v16 }
 0x5de   : > { %v2374_v0 = vpop.f32.mrf.mxu1 }
 0x5df   : > { %2478 = vst [vmem:[%s4334_s11 + $0xe0] sm:$0xff] %v2446_v28  ;;  %v2449_v32 = vadd.f32 %v2417_v42, %v2383_v51  ;;  %v2375_v60 = vadd.f32 %v4327_v16, %v2374_v0 }
 0x5e1   : > { %2481 = vst [vmem:[%s4334_s11 + $0xf8] sm:$0xff] %v2449_v32  ;;  %v2447_v5 = vadd.f32 %v2415_v8, %v2375_v60 }
 0x5e3   : > { %2479 = vst [vmem:[%s4334_s11 + $0xe8] sm:$0xff] %v2447_v5 }
 0x5e4   : > { %3493 = shalt.err (!%p3490_p5)
}
 0x5e5   : > { %s3494_s30 = scalar_lea.hbm %s4415_s1, 4096  ;;  %s3498_s25 = scalar_lea.hbm %s4472_s5, 8192 }
 0x5e6   : > { %p3495_p10 = scmp.ne.s32.totalorder %s4415_s1, %s3494_s30  ;;  %p3499_p6 = scmp.lt.s32.totalorder %s4415_s1, %s4472_s5 }
 0x5e7   : > { %p3500_p12 = scmp.lt.s32.totalorder %s3498_s25, %s3494_s30 }
 0x5e8   : > { %p3496_p1 = pnand %p3495_p10, %p3705_p7 }
 0x5e9   : > { %p3501_p3 = por %p3500_p12, %p3499_p6 }
 0x5ea   : > { %p3497_p4 = pneg %p3496_p1 }
 0x5ec   : > { %p3502_p8 = pnand %p3501_p3, %p3497_p4 }
 0x5ee   : > { %3505 = shalt.err (!%p3502_p8)
}
 0x5ef   : > { %s3575_s9 = smov 128   ;;  %s3576_s10 = smov 8  }
 0x5f0   : > { %3075 = dma.vmem_to_hbm [thread:$0]  (%p3705_p7), %s4417_s13, 4096, %s4415_s1, %s2483_s21, %s3575_s9, %s3575_s9, %s3576_s10  }
 0x5f1 PF: > { %s2513_s15 = sand.u32 1, %s3544_s18   ;;  %p4510_p9 = scmp.ne.s32.totalorder %s4483_s29, 0 }
 0x5f2   : > { %p4511_p11 = scmp.ge.s32.totalorder %s3564_s23, 2  ;;  %s2514_s16 = scalar_lea.sflag [#allocation6], %s2513_s15 }
 0x5f4   : > { %p3089_p2 = pnand %p4511_p11, %p4510_p9 }
 0x5f6   : > { %p3090_p13 = pneg %p3089_p2 }
 0x5f8   : > { %3539 = dma.done.wait (%p3090_p13), %s2514_s16, 4096  }
 0x5f9   : > { %3541 = vsyncadd (%p3090_p13), %s2514_s16, 4294963200  ;;  %s22_s23 = sadd.s32 1, %s3564_s23   ;;  %s4512_s18 = smov %s3548_s19 }
 0x5fa   : > { %p19_p0 = scmp.ge.s32.totalorder %s22_s23, 4   ;;  %s4513_s19 = smov %s3552_s20 }
 0x5fb   : > { %s4514_s20 = smov %s3714_s14  ;;  %s4515_s21 = smov %s3560_s22 }
 0x5fc   : > { %s4516_s22 = smov %s4518_s7  ;;  %21 = sbr.rel (!%p19_p0) target bundleno = 9 (0x9), region = 98 }
 0x601   :  { %2519 = vsyncpa [#allocation5], 1 }
 0x602   :  { %2521 = vsyncpa [#allocation5 + $0x1], 1 }
 0x603   :  { %2522 = vsyncpa [#allocation8], 1 }
 0x604   :  { %2523 = vsyncpa [#allocation6], 1 }
 0x605   :  { %2525 = vsyncpa [#allocation6 + $0x1], 1 }

</bundles_post_ra>
